<compile_context>
chip_gen: v6e
topology: v6e:2x2x1
jax: 0.10.0
libtpu: 0.0.40
codegen_flags: <defaults>
</compile_context>

<pallas_src>
import math
import functools

import jax
import jax.numpy as jnp
from jax import lax
from jax.experimental import pallas as pl
from jax.experimental.pallas import tpu as pltpu


# ---------------------------------------------------------------------------
# helpers
# ---------------------------------------------------------------------------

def _round_up(x, m):
    return (x + m - 1) // m * m


def _softplus(x):
    # matches F.softplus (threshold=20), numerically stable
    return jnp.where(x > 20.0, x, jnp.log1p(jnp.exp(jnp.minimum(x, 20.0))))


def _silu(x):
    return x * jax.nn.sigmoid(x)


# ---------------------------------------------------------------------------
# Pallas kernels
# ---------------------------------------------------------------------------

def residual_layers_kernel(
    x_ref,      # (1, L, Dp)    f32  embeddings for this batch element
    nw_ref,     # (1, 1, Dp)    f32  RMSNorm weight (lane padded)
    win_ref,    # (1, Dp, 2DI)  bf16 fused [in_proj_left | in_proj_right]
    cw_ref,     # (1, K, DI)    f32  depthwise conv taps (tap, channel)
    cb_ref,     # (1, 1, DI)    f32  conv bias
    wx_ref,     # (1, DI, R+2N) bf16 fused x_proj [delta | B | C]
    wdt_ref,    # (1, R, DI)    f32  dt_proj
    at_ref,     # (1, N, DI)    f32  A^T = (-exp(A_log)).T  (precomputed)
    d_ref,      # (1, 1, DI)    f32  skip connection D
    wout_ref,   # (1, DI, Dp)   bf16 out_proj (output lane padded)
    out_ref,    # (1, L, Dp)    f32  residual stream, resident across layers
    u_s,        # (L, DI) f32 scratch: silu(conv) activations
    dl_s,       # (L, DI) f32 scratch: delta (post softplus)
    du_s,       # (L, DI) f32 scratch: delta * u  (precomputed for the scan)
    b_s,        # (L, N)  f32 scratch: B
    c_s,        # (L, N)  f32 scratch: C
    y_s,        # (L, DI) f32 scratch: per-step scan outputs
    *, d_model,
):
    layer = pl.program_id(1)
    L = x_ref.shape[1]
    di = at_ref.shape[2]
    n = at_ref.shape[1]
    r = wdt_ref.shape[1]
    k = cw_ref.shape[1]

    # layer 0: initialise the resident residual stream from the embeddings
    @pl.when(layer == 0)
    def _():
        out_ref[...] = x_ref[...]

    x = out_ref[0]                                              # (L, Dp)

    # ---- RMSNorm (sum over true d_model; lane padding is zero) ----
    ms = jnp.sum(x * x, axis=-1, keepdims=True) * (1.0 / d_model)
    xn = x * lax.rsqrt(ms + 1e-5) * nw_ref[0]                   # (L, Dp)

    # ---- fused input projection: single lane-dense (L, 2*DI) matmul ----
    xr = jnp.dot(xn.astype(jnp.bfloat16), win_ref[0],
                 preferred_element_type=jnp.float32)            # (L, 2*DI)
    xi = xr[:, :di]                                             # conv branch
    res = xr[:, di:]                                            # gate branch

    # ---- causal depthwise conv along L: K shifted adds via sublane roll ----
    cw = cw_ref[0]                                              # (K, DI)
    row = lax.broadcasted_iota(jnp.int32, (L, 1), 0)
    conv = xi * cw[k - 1:k, :]                                  # shift-0 tap
    for s in range(1, k):
        shifted = pltpu.roll(xi, shift=s, axis=0)               # out[t] = xi[t-s]
        shifted = jnp.where(row >= s, shifted, 0.0)             # causal mask
        conv = conv + shifted * cw[k - 1 - s:k - s, :]
    conv = conv + cb_ref[0]
    u = _silu(conv)                                             # (L, DI)
    u_s[...] = u

    # ---- fused x_proj ([delta_lowrank | B | C]) + dt_proj + softplus ----
    xdbl = jnp.dot(u.astype(jnp.bfloat16), wx_ref[0],
                   preferred_element_type=jnp.float32)          # (L, R+2N)
    dlr = xdbl[:, :r]
    b_s[...] = xdbl[:, r:r + n]
    c_s[...] = xdbl[:, r + n:r + 2 * n]
    # dt_proj kept in f32 (tiny R contraction, feeds exp())
    delta = _softplus(jnp.dot(dlr, wdt_ref[0],
                              preferred_element_type=jnp.float32))
    dl_s[...] = delta
    du_s[...] = delta * u                                       # hoisted out of scan

    # ---- selective scan: state (N, DI) -> large DI dim on the lane axis ----
    a_t = at_ref[0]                                             # (N, DI)
    rows_n = lax.broadcasted_iota(jnp.int32, (n, n), 0)
    cols_n = lax.broadcasted_iota(jnp.int32, (n, n), 1)
    eye_n = (rows_n == cols_n).astype(jnp.float32)              # (N, N)

    def step(t, state):
        dl_row = dl_s[pl.ds(t, 1), :]                           # (1, DI)
        du_row = du_s[pl.ds(t, 1), :]                           # (1, DI)
        b_row = b_s[pl.ds(t, 1), :]                             # (1, N)
        c_row = c_s[pl.ds(t, 1), :]                             # (1, N)
        d_a = jnp.exp(dl_row * a_t)                             # (N, DI)  EUP
        b_col = jnp.sum(eye_n * b_row, axis=1, keepdims=True)   # (N, 1)   XLU
        state = d_a * state + b_col * du_row                    # (N, DI)
        # C contraction as a (1,N)@(N,DI) MXU matvec
        y_s[pl.ds(t, 1), :] = jnp.dot(c_row, state,
                                      preferred_element_type=jnp.float32)
        return state

    lax.fori_loop(0, L, step, jnp.zeros((n, di), jnp.float32), unroll=True)

    # ---- skip term, gate, output projection, residual add ----
    y = y_s[...] + u_s[...] * d_ref[0]                          # (L, DI)
    y = y * _silu(res)
    out = jnp.dot(y.astype(jnp.bfloat16), wout_ref[0],
                  preferred_element_type=jnp.float32)           # (L, Dp)
    out_ref[...] = (x + out)[None]


def lm_head_kernel(x_ref, nw_ref, emb_ref, out_ref, *, d_model):
    # final RMSNorm + tied lm_head, lane-dense (Vp = 128-multiple) output
    x = x_ref[0]                                                # (L, Dp)
    ms = jnp.sum(x * x, axis=-1, keepdims=True) * (1.0 / d_model)
    xn = x * lax.rsqrt(ms + 1e-5) * nw_ref[...]
    logits = jnp.dot(xn.astype(jnp.bfloat16), emb_ref[...],
                     preferred_element_type=jnp.float32)        # (L, Vp)
    out_ref[...] = logits[None]


# ---------------------------------------------------------------------------
# pallas_call wrappers
# ---------------------------------------------------------------------------

def run_layers(x, lp, *, d_model):
    B, L, Dp = x.shape
    n_layer = lp["norm_w"].shape[0]
    di = lp["a_t"].shape[2]
    n = lp["a_t"].shape[1]

    def wspec(arr):
        return pl.BlockSpec((1,) + arr.shape[1:], lambda b, l: (l, 0, 0))

    kernel = functools.partial(residual_layers_kernel, d_model=d_model)
    return pl.pallas_call(
        kernel,
        out_shape=jax.ShapeDtypeStruct((B, L, Dp), jnp.float32),
        grid=(B, n_layer),
        in_specs=[
            pl.BlockSpec((1, L, Dp), lambda b, l: (b, 0, 0)),
            wspec(lp["norm_w"]), wspec(lp["w_in"]), wspec(lp["conv_w"]),
            wspec(lp["conv_b"]), wspec(lp["w_x"]), wspec(lp["w_dt"]),
            wspec(lp["a_t"]), wspec(lp["d"]), wspec(lp["w_out"]),
        ],
        out_specs=pl.BlockSpec((1, L, Dp), lambda b, l: (b, 0, 0)),
        scratch_shapes=[
            pltpu.VMEM((L, di), jnp.float32),   # u = silu(conv)
            pltpu.VMEM((L, di), jnp.float32),   # delta
            pltpu.VMEM((L, di), jnp.float32),   # delta * u
            pltpu.VMEM((L, n), jnp.float32),    # B
            pltpu.VMEM((L, n), jnp.float32),    # C
            pltpu.VMEM((L, di), jnp.float32),   # y (scan outputs)
        ],
        compiler_params=pltpu.CompilerParams(
            dimension_semantics=("parallel", "arbitrary"),
            vmem_limit_bytes=32 * 1024 * 1024),
    )(x, lp["norm_w"], lp["w_in"], lp["conv_w"], lp["conv_b"], lp["w_x"],
      lp["w_dt"], lp["a_t"], lp["d"], lp["w_out"])


def run_head(x, norm_w_pad, emb_t_pad, *, d_model):
    B, L, Dp = x.shape
    Vp = emb_t_pad.shape[1]
    kernel = functools.partial(lm_head_kernel, d_model=d_model)
    return pl.pallas_call(
        kernel,
        out_shape=jax.ShapeDtypeStruct((B, L, Vp), jnp.float32),
        grid=(B,),
        in_specs=[
            pl.BlockSpec((1, L, Dp), lambda b: (b, 0, 0)),
            pl.BlockSpec((1, Dp), lambda b: (0, 0)),
            pl.BlockSpec((Dp, Vp), lambda b: (0, 0)),
        ],
        out_specs=pl.BlockSpec((1, L, Vp), lambda b: (b, 0, 0)),
        compiler_params=pltpu.CompilerParams(
            dimension_semantics=("parallel",),
            vmem_limit_bytes=32 * 1024 * 1024),
    )(x, norm_w_pad, emb_t_pad)


# ---------------------------------------------------------------------------
# Parameter construction (module-faithful) and kernel-side packing
# ---------------------------------------------------------------------------

def make_params(key, d_model, d_inner, d_state, dt_rank, d_conv, n_layer, vocab_size):
    keys = jax.random.split(key, 2 + 8 * n_layer)
    kidx = 0

    def nxt():
        nonlocal kidx
        k = keys[kidx]
        kidx += 1
        return k

    def linear_w(k, out_f, in_f):
        bound = 1.0 / math.sqrt(in_f)
        return jax.random.uniform(k, (out_f, in_f), jnp.float32, -bound, bound)

    embedding = jax.random.normal(nxt(), (vocab_size, d_model), jnp.float32) * 0.02

    layers = []
    for _ in range(n_layer):
        w_in_l = linear_w(nxt(), d_inner, d_model)
        w_in_r = linear_w(nxt(), d_inner, d_model)
        conv_w = jax.random.uniform(
            nxt(), (d_inner, d_conv), jnp.float32,
            -1.0 / math.sqrt(d_conv), 1.0 / math.sqrt(d_conv))
        conv_b = jax.random.uniform(
            nxt(), (d_inner,), jnp.float32,
            -1.0 / math.sqrt(d_conv), 1.0 / math.sqrt(d_conv))
        x_proj = linear_w(nxt(), dt_rank + 2 * d_state, d_inner)
        dt_proj = linear_w(nxt(), d_inner, dt_rank)
        out_proj = linear_w(nxt(), d_model, d_inner)
        A_log = jnp.log(jnp.tile(jnp.arange(1, d_state + 1, dtype=jnp.float32),
                                 (d_inner, 1)))
        layers.append({
            "norm_w": jnp.ones((1, d_model), jnp.float32),
            "w_in_l": w_in_l.T,                             # (D, DI)
            "w_in_r": w_in_r.T,                             # (D, DI)
            "conv_w": conv_w.T,                             # (K, DI)
            "conv_b": conv_b.reshape(1, d_inner),
            "w_delta": x_proj[:dt_rank, :].T,               # (DI, R)
            "w_B": x_proj[dt_rank:dt_rank + d_state, :].T,  # (DI, N)
            "w_C": x_proj[dt_rank + d_state:, :].T,         # (DI, N)
            "w_dt": dt_proj.T,                              # (R, DI)
            "A_log": A_log,                                 # (DI, N)
            "D": jnp.ones((1, d_inner), jnp.float32),
            "w_out": out_proj.T,                            # (DI, D)
        })

    final_norm_w = jnp.ones((1, d_model), jnp.float32)
    return embedding, layers, final_norm_w


def pack_params(embedding, layers, final_norm_w):
    """Fuse / transpose / lane-pad / stack weights for the Pallas kernels."""
    V, D = embedding.shape
    Dp = _round_up(D, 128)
    Vp = _round_up(V, 128)

    def stack(fn):
        return jnp.stack([fn(p) for p in layers], axis=0)

    layer_pack = {
        "norm_w": stack(lambda p: jnp.pad(p["norm_w"], ((0, 0), (0, Dp - D)))),
        "w_in": stack(lambda p: jnp.pad(
            jnp.concatenate([p["w_in_l"], p["w_in_r"]], axis=1),
            ((0, Dp - D), (0, 0)))).astype(jnp.bfloat16),
        "conv_w": stack(lambda p: p["conv_w"]),
        "conv_b": stack(lambda p: p["conv_b"]),
        "w_x": stack(lambda p: jnp.concatenate(
            [p["w_delta"], p["w_B"], p["w_C"]], axis=1)).astype(jnp.bfloat16),
        "w_dt": stack(lambda p: p["w_dt"]),
        "a_t": stack(lambda p: (-jnp.exp(p["A_log"])).T),   # precomputed A^T
        "d": stack(lambda p: p["D"]),
        "w_out": stack(lambda p: jnp.pad(
            p["w_out"], ((0, 0), (0, Dp - D)))).astype(jnp.bfloat16),
    }
    emb_pad = jnp.pad(embedding, ((0, 0), (0, Dp - D)))          # (V, Dp) f32
    emb_t = jnp.pad(embedding, ((0, Vp - V), (0, Dp - D))).T     # (Dp, Vp)
    return {
        "layers": layer_pack,
        "emb_pad": emb_pad,
        "emb_t": emb_t.astype(jnp.bfloat16),
        "final_norm_w": jnp.pad(final_norm_w, ((0, 0), (0, Dp - D))),
    }


# ---------------------------------------------------------------------------
# Full forward (embedding gather is XLA glue; everything else is Pallas)
# ---------------------------------------------------------------------------

def mamba_forward(input_ids, packed, *, d_model, vocab_size):
    # TODO(synk): token-id embedding gather stays in XLA (jnp.take); a Pallas
    # DMA-gather adds nothing at these sizes.
    x = jnp.take(packed["emb_pad"], input_ids, axis=0)           # (B, L, Dp)
    x = run_layers(x, packed["layers"], d_model=d_model)
    logits = run_head(x, packed["final_norm_w"], packed["emb_t"],
                      d_model=d_model)                           # (B, L, Vp)
    return logits[..., :vocab_size]


# pure-JAX f32 reference (same math as the PyTorch module) for sanity check
def mamba_forward_ref(input_ids, embedding, layers, final_norm_w):
    def rms(x, w):
        return x * jax.lax.rsqrt(jnp.mean(x * x, -1, keepdims=True) + 1e-5) * w[0]

    x = jnp.take(embedding, input_ids, axis=0).astype(jnp.float32)
    for p in layers:
        B, L, D = x.shape
        DI = p["w_in_l"].shape[1]
        N = p["A_log"].shape[1]
        K = p["conv_w"].shape[0]
        xn = rms(x, p["norm_w"])
        res = xn @ p["w_in_r"]
        xi = xn @ p["w_in_l"]
        padded = jnp.concatenate([jnp.zeros((B, K - 1, DI)), xi], axis=1)
        conv = sum(padded[:, k:k + L, :] * p["conv_w"][k] for k in range(K)) + p["conv_b"][0]
        xc = conv * jax.nn.sigmoid(conv)
        dlr = xc @ p["w_delta"]
        Bm = xc @ p["w_B"]
        Cm = xc @ p["w_C"]
        delta = jax.nn.softplus(dlr @ p["w_dt"])
        A = -jnp.exp(p["A_log"])
        dA = jnp.exp(delta[..., None] * A)
        dBu = delta[..., None] * Bm[:, :, None, :] * xc[..., None]
        state = jnp.zeros((B, DI, N))
        ys = []
        for i in range(L):
            state = dA[:, i] * state + dBu[:, i]
            ys.append(jnp.sum(state * Cm[:, i, None, :], -1))
        y = jnp.stack(ys, 1) + xc * p["D"][0]
        y = y * (res * jax.nn.sigmoid(res))
        x = y @ p["w_out"] + x
    xn = rms(x, final_norm_w)
    return xn @ embedding.T


# ---------------------------------------------------------------------------

if __name__ == "__main__":
    # small config consistent with the module's __init__ logic
    d_model = 32
    n_layer = 2
    vocab_size = 48            # already a multiple of pad_vocab_size_multiple=8
    d_state = 16
    expand = 2
    d_conv = 4
    d_inner = d_model * expand                 # 64
    dt_rank = math.ceil(d_model / 16)          # 2
    batch, seqlen = 2, 8

    key = jax.random.PRNGKey(0)
    pkey, ikey = jax.random.split(key)
    embedding, layers, final_norm_w = make_params(
        pkey, d_model, d_inner, d_state, dt_rank, d_conv, n_layer, vocab_size)
    packed = pack_params(embedding, layers, final_norm_w)

    input_ids = jax.random.randint(ikey, (batch, seqlen), 0, vocab_size,
                                   dtype=jnp.int32)

    logits = mamba_forward(input_ids, packed, d_model=d_model,
                           vocab_size=vocab_size)
    logits = jax.block_until_ready(logits)
    assert logits.shape == (batch, seqlen, vocab_size)

    ref = jax.block_until_ready(
        mamba_forward_ref(input_ids, embedding, layers, final_norm_w))
    max_err = jnp.max(jnp.abs(logits - ref))
    # matmuls run in bf16 (f32 accumulate) -> compare with a bf16-appropriate tolerance
    assert jnp.allclose(logits, ref, rtol=5e-2, atol=5e-2), \
        f"mismatch vs JAX reference (max abs err {max_err})"

    print("KERNEL_OK")
</pallas_src>

<mosaic_0001>
module attributes {stable_mosaic.version = 11 : i64} {
  func.func @residual_layers_kernel(%arg0: i32, %arg1: i32, %arg2: memref<1x8x128xf32, #tpu.memory_space<vmem>>, %arg3: memref<1x1x128xf32, #tpu.memory_space<vmem>>, %arg4: memref<1x128x128xbf16, #tpu.memory_space<vmem>>, %arg5: memref<1x4x64xf32, #tpu.memory_space<vmem>>, %arg6: memref<1x1x64xf32, #tpu.memory_space<vmem>>, %arg7: memref<1x64x34xbf16, #tpu.memory_space<vmem>>, %arg8: memref<1x2x64xf32, #tpu.memory_space<vmem>>, %arg9: memref<1x16x64xf32, #tpu.memory_space<vmem>>, %arg10: memref<1x1x64xf32, #tpu.memory_space<vmem>>, %arg11: memref<1x64x128xbf16, #tpu.memory_space<vmem>>, %arg12: memref<1x8x128xf32, #tpu.memory_space<vmem>>, %arg13: memref<8x64xf32, #tpu.memory_space<vmem>>, %arg14: memref<8x64xf32, #tpu.memory_space<vmem>>, %arg15: memref<8x64xf32, #tpu.memory_space<vmem>>, %arg16: memref<8x16xf32, #tpu.memory_space<vmem>>, %arg17: memref<8x16xf32, #tpu.memory_space<vmem>>, %arg18: memref<8x64xf32, #tpu.memory_space<vmem>>) attributes {dimension_semantics = [#tpu.dimension_semantics<parallel>, #tpu.dimension_semantics<arbitrary>], iteration_bounds = array<i64: 2, 2>, scalar_prefetch = 0 : i64, scratch_operands = 6 : i64, tpu.core_type = #tpu.core_type<tc>, window_params = [{transform_indices = @transform_0, window_bounds = array<i64: 1, 8, 128>}, {transform_indices = @transform_1, window_bounds = array<i64: 1, 1, 128>}, {transform_indices = @transform_2, window_bounds = array<i64: 1, 128, 128>}, {transform_indices = @transform_3, window_bounds = array<i64: 1, 4, 64>}, {transform_indices = @transform_4, window_bounds = array<i64: 1, 1, 64>}, {transform_indices = @transform_5, window_bounds = array<i64: 1, 64, 34>}, {transform_indices = @transform_6, window_bounds = array<i64: 1, 2, 64>}, {transform_indices = @transform_7, window_bounds = array<i64: 1, 16, 64>}, {transform_indices = @transform_8, window_bounds = array<i64: 1, 1, 64>}, {transform_indices = @transform_9, window_bounds = array<i64: 1, 64, 128>}, {transform_indices = @transform_10, window_bounds = array<i64: 1, 8, 128>}]} {
    %c0_i32 = arith.constant 0 : i32
    %0 = arith.cmpi eq, %arg1, %c0_i32 : i32
    %1 = arith.extui %0 : i1 to i32
    %c0_i32_0 = arith.constant 0 : i32
    %2 = arith.cmpi ne, %1, %c0_i32_0 : i32
    scf.if %2 {
      %c0_124 = arith.constant 0 : index
      %c0_125 = arith.constant 0 : index
      %c0_126 = arith.constant 0 : index
      %310 = vector.load %arg2[%c0_124, %c0_125, %c0_126] : memref<1x8x128xf32, #tpu.memory_space<vmem>>, vector<1x8x128xf32>
      %c0_127 = arith.constant 0 : index
      %c0_128 = arith.constant 0 : index
      %c0_129 = arith.constant 0 : index
      %311 = vector.load %arg12[%c0_127, %c0_128, %c0_129] : memref<1x8x128xf32, #tpu.memory_space<vmem>>, vector<1x8x128xf32>
      tpu.vector_store %arg12[%c0_127, %c0_128, %c0_129], %310 {strides = array<i32>} : memref<1x8x128xf32, #tpu.memory_space<vmem>>, vector<1x8x128xf32>,
    } else {
    }
    %c0 = arith.constant 0 : index
    %c0_1 = arith.constant 0 : index
    %c0_2 = arith.constant 0 : index
    %3 = vector.load %arg12[%c0, %c0_1, %c0_2] : memref<1x8x128xf32, #tpu.memory_space<vmem>>, vector<1x8x128xf32>
    %4 = vector.shape_cast %3 : vector<1x8x128xf32> to vector<8x128xf32>
    %5 = arith.mulf %4, %4 : vector<8x128xf32>
    %cst = arith.constant dense<0.000000e+00> : vector<8xf32>
    %6 = vector.multi_reduction <add>, %5, %cst [1] : vector<8x128xf32> to vector<8xf32>
    %7 = vector.shape_cast %6 : vector<8xf32> to vector<8x1xf32>
    %cst_3 = arith.constant 3.125000e-02 : f32
    %8 = vector.broadcast %cst_3 : f32 to vector<8x1xf32>
    %9 = arith.mulf %7, %8 : vector<8x1xf32>
    %cst_4 = arith.constant 9.99999974E-6 : f32
    %10 = vector.broadcast %cst_4 : f32 to vector<8x1xf32>
    %11 = arith.addf %9, %10 : vector<8x1xf32>
    %12 = math.rsqrt %11 : vector<8x1xf32>
    %13 = vector.broadcast %12 : vector<8x1xf32> to vector<8x128xf32>
    %14 = arith.mulf %4, %13 : vector<8x128xf32>
    %c0_5 = arith.constant 0 : index
    %c0_6 = arith.constant 0 : index
    %c0_7 = arith.constant 0 : index
    %15 = vector.load %arg3[%c0_5, %c0_6, %c0_7] : memref<1x1x128xf32, #tpu.memory_space<vmem>>, vector<1x1x128xf32>
    %16 = vector.shape_cast %15 : vector<1x1x128xf32> to vector<1x128xf32>
    %17 = vector.broadcast %16 : vector<1x128xf32> to vector<8x128xf32>
    %18 = arith.mulf %14, %17 : vector<8x128xf32>
    %19 = arith.truncf %18 : vector<8x128xf32> to vector<8x128xbf16>
    %c0_8 = arith.constant 0 : index
    %c0_9 = arith.constant 0 : index
    %c0_10 = arith.constant 0 : index
    %20 = vector.load %arg4[%c0_8, %c0_9, %c0_10] : memref<1x128x128xbf16, #tpu.memory_space<vmem>>, vector<1x128x128xbf16>
    %21 = vector.shape_cast %20 : vector<1x128x128xbf16> to vector<128x128xbf16>
    %cst_11 = arith.constant dense<0.000000e+00> : vector<8x128xf32>
    %22 = tpu.matmul %19, %21, %cst_11 {dimension_numbers = #tpu.dot_dimension_numbers<[1], [0], [0], [1], [0, 0, 1, 1], [], []>} : vector<8x128xbf16>, vector<128x128xbf16>, vector<8x128xf32> -> vector<8x128xf32>
    %23 = vector.extract_strided_slice %22 {offsets = [0, 0], sizes = [8, 64], strides = [1, 1]} : vector<8x128xf32> to vector<8x64xf32>
    %24 = vector.extract_strided_slice %22 {offsets = [0, 64], sizes = [8, 64], strides = [1, 1]} : vector<8x128xf32> to vector<8x64xf32>
    %c0_12 = arith.constant 0 : index
    %c0_13 = arith.constant 0 : index
    %c0_14 = arith.constant 0 : index
    %25 = vector.load %arg5[%c0_12, %c0_13, %c0_14] : memref<1x4x64xf32, #tpu.memory_space<vmem>>, vector<1x4x64xf32>
    %26 = vector.shape_cast %25 : vector<1x4x64xf32> to vector<4x64xf32>
    %27 = tpu.iota {dimensions = array<i32: 0>} : vector<8x1xi32>
    %28 = vector.extract_strided_slice %26 {offsets = [3, 0], sizes = [1, 64], strides = [1, 1]} : vector<4x64xf32> to vector<1x64xf32>
    %29 = vector.broadcast %28 : vector<1x64xf32> to vector<8x64xf32>
    %30 = arith.mulf %23, %29 : vector<8x64xf32>
    %c1_i32 = arith.constant 1 : i32
    %31 = tpu.dynamic_rotate %23 by %c1_i32 dim 0 : vector<8x64xf32>, i32 -> vector<8x64xf32>
    %c1_i32_15 = arith.constant 1 : i32
    %32 = vector.broadcast %c1_i32_15 : i32 to vector<8x1xi32>
    %33 = arith.cmpi sge, %27, %32 : vector<8x1xi32>
    %cst_16 = arith.constant 0.000000e+00 : f32
    %34 = vector.shape_cast %33 : vector<8x1xi1> to vector<8x1xi1>
    %35 = vector.broadcast %34 : vector<8x1xi1> to vector<8x64xi1>
    %36 = vector.broadcast %cst_16 : f32 to vector<8x64xf32>
    %37 = arith.select %35, %31, %36 : vector<8x64xi1>, vector<8x64xf32>
    %38 = vector.extract_strided_slice %26 {offsets = [2, 0], sizes = [1, 64], strides = [1, 1]} : vector<4x64xf32> to vector<1x64xf32>
    %39 = vector.broadcast %38 : vector<1x64xf32> to vector<8x64xf32>
    %40 = arith.mulf %37, %39 : vector<8x64xf32>
    %41 = arith.addf %30, %40 : vector<8x64xf32>
    %c2_i32 = arith.constant 2 : i32
    %42 = tpu.dynamic_rotate %23 by %c2_i32 dim 0 : vector<8x64xf32>, i32 -> vector<8x64xf32>
    %c2_i32_17 = arith.constant 2 : i32
    %43 = vector.broadcast %c2_i32_17 : i32 to vector<8x1xi32>
    %44 = arith.cmpi sge, %27, %43 : vector<8x1xi32>
    %cst_18 = arith.constant 0.000000e+00 : f32
    %45 = vector.shape_cast %44 : vector<8x1xi1> to vector<8x1xi1>
    %46 = vector.broadcast %45 : vector<8x1xi1> to vector<8x64xi1>
    %47 = vector.broadcast %cst_18 : f32 to vector<8x64xf32>
    %48 = arith.select %46, %42, %47 : vector<8x64xi1>, vector<8x64xf32>
    %49 = vector.extract_strided_slice %26 {offsets = [1, 0], sizes = [1, 64], strides = [1, 1]} : vector<4x64xf32> to vector<1x64xf32>
    %50 = vector.broadcast %49 : vector<1x64xf32> to vector<8x64xf32>
    %51 = arith.mulf %48, %50 : vector<8x64xf32>
    %52 = arith.addf %41, %51 : vector<8x64xf32>
    %c3_i32 = arith.constant 3 : i32
    %53 = tpu.dynamic_rotate %23 by %c3_i32 dim 0 : vector<8x64xf32>, i32 -> vector<8x64xf32>
    %c3_i32_19 = arith.constant 3 : i32
    %54 = vector.broadcast %c3_i32_19 : i32 to vector<8x1xi32>
    %55 = arith.cmpi sge, %27, %54 : vector<8x1xi32>
    %cst_20 = arith.constant 0.000000e+00 : f32
    %56 = vector.shape_cast %55 : vector<8x1xi1> to vector<8x1xi1>
    %57 = vector.broadcast %56 : vector<8x1xi1> to vector<8x64xi1>
    %58 = vector.broadcast %cst_20 : f32 to vector<8x64xf32>
    %59 = arith.select %57, %53, %58 : vector<8x64xi1>, vector<8x64xf32>
    %60 = vector.extract_strided_slice %26 {offsets = [0, 0], sizes = [1, 64], strides = [1, 1]} : vector<4x64xf32> to vector<1x64xf32>
    %61 = vector.broadcast %60 : vector<1x64xf32> to vector<8x64xf32>
    %62 = arith.mulf %59, %61 : vector<8x64xf32>
    %63 = arith.addf %52, %62 : vector<8x64xf32>
    %c0_21 = arith.constant 0 : index
    %c0_22 = arith.constant 0 : index
    %c0_23 = arith.constant 0 : index
    %64 = vector.load %arg6[%c0_21, %c0_22, %c0_23] : memref<1x1x64xf32, #tpu.memory_space<vmem>>, vector<1x1x64xf32>
    %65 = vector.shape_cast %64 : vector<1x1x64xf32> to vector<1x64xf32>
    %66 = vector.broadcast %65 : vector<1x64xf32> to vector<8x64xf32>
    %67 = arith.addf %63, %66 : vector<8x64xf32>
    %68 = arith.negf %67 : vector<8x64xf32>
    %69 = math.exp %68 : vector<8x64xf32>
    %cst_24 = arith.constant 1.000000e+00 : f32
    %70 = vector.broadcast %cst_24 : f32 to vector<8x64xf32>
    %71 = arith.addf %70, %69 : vector<8x64xf32>
    %72 = arith.divf %70, %71 : vector<8x64xf32>
    %73 = arith.mulf %67, %72 : vector<8x64xf32>
    %c0_25 = arith.constant 0 : index
    %c0_26 = arith.constant 0 : index
    %74 = vector.load %arg13[%c0_25, %c0_26] : memref<8x64xf32, #tpu.memory_space<vmem>>, vector<8x64xf32>
    tpu.vector_store %arg13[%c0_25, %c0_26], %73 {strides = array<i32>} : memref<8x64xf32, #tpu.memory_space<vmem>>, vector<8x64xf32>,
    %75 = arith.truncf %73 : vector<8x64xf32> to vector<8x64xbf16>
    %c0_27 = arith.constant 0 : index
    %c0_28 = arith.constant 0 : index
    %c0_29 = arith.constant 0 : index
    %76 = vector.load %arg7[%c0_27, %c0_28, %c0_29] : memref<1x64x34xbf16, #tpu.memory_space<vmem>>, vector<1x64x34xbf16>
    %77 = vector.shape_cast %76 : vector<1x64x34xbf16> to vector<64x34xbf16>
    %cst_30 = arith.constant dense<0.000000e+00> : vector<8x34xf32>
    %78 = tpu.matmul %75, %77, %cst_30 {dimension_numbers = #tpu.dot_dimension_numbers<[1], [0], [0], [1], [0, 0, 1, 1], [], []>} : vector<8x64xbf16>, vector<64x34xbf16>, vector<8x34xf32> -> vector<8x34xf32>
    %79 = vector.extract_strided_slice %78 {offsets = [0, 0], sizes = [8, 2], strides = [1, 1]} : vector<8x34xf32> to vector<8x2xf32>
    %80 = vector.extract_strided_slice %78 {offsets = [0, 2], sizes = [8, 16], strides = [1, 1]} : vector<8x34xf32> to vector<8x16xf32>
    %c0_31 = arith.constant 0 : index
    %c0_32 = arith.constant 0 : index
    %81 = vector.load %arg16[%c0_31, %c0_32] : memref<8x16xf32, #tpu.memory_space<vmem>>, vector<8x16xf32>
    tpu.vector_store %arg16[%c0_31, %c0_32], %80 {strides = array<i32>} : memref<8x16xf32, #tpu.memory_space<vmem>>, vector<8x16xf32>,
    %82 = vector.extract_strided_slice %78 {offsets = [0, 18], sizes = [8, 16], strides = [1, 1]} : vector<8x34xf32> to vector<8x16xf32>
    %c0_33 = arith.constant 0 : index
    %c0_34 = arith.constant 0 : index
    %83 = vector.load %arg17[%c0_33, %c0_34] : memref<8x16xf32, #tpu.memory_space<vmem>>, vector<8x16xf32>
    tpu.vector_store %arg17[%c0_33, %c0_34], %82 {strides = array<i32>} : memref<8x16xf32, #tpu.memory_space<vmem>>, vector<8x16xf32>,
    %c0_35 = arith.constant 0 : index
    %c0_36 = arith.constant 0 : index
    %c0_37 = arith.constant 0 : index
    %84 = vector.load %arg8[%c0_35, %c0_36, %c0_37] : memref<1x2x64xf32, #tpu.memory_space<vmem>>, vector<1x2x64xf32>
    %85 = vector.shape_cast %84 : vector<1x2x64xf32> to vector<2x64xf32>
    %cst_38 = arith.constant dense<0.000000e+00> : vector<8x64xf32>
    %86 = tpu.matmul %79, %85, %cst_38 {dimension_numbers = #tpu.dot_dimension_numbers<[1], [0], [0], [1], [0, 0, 1, 1], [], []>} : vector<8x2xf32>, vector<2x64xf32>, vector<8x64xf32> -> vector<8x64xf32>
    %cst_39 = arith.constant 2.000000e+01 : f32
    %87 = vector.broadcast %cst_39 : f32 to vector<8x64xf32>
    %88 = arith.cmpf ogt, %86, %87 : vector<8x64xf32>
    %cst_40 = arith.constant 2.000000e+01 : f32
    %89 = vector.broadcast %cst_40 : f32 to vector<8x64xf32>
    %90 = arith.minimumf %86, %89 : vector<8x64xf32>
    %91 = math.exp %90 : vector<8x64xf32>
    %92 = math.log1p %91 : vector<8x64xf32>
    %93 = arith.select %88, %86, %92 : vector<8x64xi1>, vector<8x64xf32>
    %c0_41 = arith.constant 0 : index
    %c0_42 = arith.constant 0 : index
    %94 = vector.load %arg14[%c0_41, %c0_42] : memref<8x64xf32, #tpu.memory_space<vmem>>, vector<8x64xf32>
    tpu.vector_store %arg14[%c0_41, %c0_42], %93 {strides = array<i32>} : memref<8x64xf32, #tpu.memory_space<vmem>>, vector<8x64xf32>,
    %95 = arith.mulf %93, %73 : vector<8x64xf32>
    %c0_43 = arith.constant 0 : index
    %c0_44 = arith.constant 0 : index
    %96 = vector.load %arg15[%c0_43, %c0_44] : memref<8x64xf32, #tpu.memory_space<vmem>>, vector<8x64xf32>
    tpu.vector_store %arg15[%c0_43, %c0_44], %95 {strides = array<i32>} : memref<8x64xf32, #tpu.memory_space<vmem>>, vector<8x64xf32>,
    %c0_45 = arith.constant 0 : index
    %c0_46 = arith.constant 0 : index
    %c0_47 = arith.constant 0 : index
    %97 = vector.load %arg9[%c0_45, %c0_46, %c0_47] : memref<1x16x64xf32, #tpu.memory_space<vmem>>, vector<1x16x64xf32>
    %98 = vector.shape_cast %97 : vector<1x16x64xf32> to vector<16x64xf32>
    %99 = tpu.iota {dimensions = array<i32: 0>} : vector<16x16xi32>
    %100 = tpu.iota {dimensions = array<i32: 1>} : vector<16x16xi32>
    %101 = arith.cmpi eq, %99, %100 : vector<16x16xi32>
    %102 = arith.extui %101 : vector<16x16xi1> to vector<16x16xi32>
    %103 = arith.sitofp %102 : vector<16x16xi32> to vector<16x16xf32>
    %cst_48 = arith.constant 0.000000e+00 : f32
    %104 = vector.broadcast %cst_48 : f32 to vector<16x64xf32>
    %c0_i32_49 = arith.constant 0 : i32
    %105 = arith.index_cast %c0_i32_49 : i32 to index
    %c0_50 = arith.constant 0 : index
    %106 = vector.load %arg14[%105, %c0_50] : memref<8x64xf32, #tpu.memory_space<vmem>>, vector<1x64xf32>
    %107 = arith.index_cast %c0_i32_49 : i32 to index
    %c0_51 = arith.constant 0 : index
    %108 = vector.load %arg15[%107, %c0_51] : memref<8x64xf32, #tpu.memory_space<vmem>>, vector<1x64xf32>
    %109 = arith.index_cast %c0_i32_49 : i32 to index
    %c0_52 = arith.constant 0 : index
    %110 = vector.load %arg16[%109, %c0_52] : memref<8x16xf32, #tpu.memory_space<vmem>>, vector<1x16xf32>
    %111 = arith.index_cast %c0_i32_49 : i32 to index
    %c0_53 = arith.constant 0 : index
    %112 = vector.load %arg17[%111, %c0_53] : memref<8x16xf32, #tpu.memory_space<vmem>>, vector<1x16xf32>
    %113 = vector.broadcast %106 : vector<1x64xf32> to vector<16x64xf32>
    %114 = arith.mulf %113, %98 : vector<16x64xf32>
    %115 = math.exp %114 : vector<16x64xf32>
    %116 = vector.broadcast %110 : vector<1x16xf32> to vector<16x16xf32>
    %117 = arith.mulf %103, %116 : vector<16x16xf32>
    %cst_54 = arith.constant dense<0.000000e+00> : vector<16xf32>
    %118 = vector.multi_reduction <add>, %117, %cst_54 [1] : vector<16x16xf32> to vector<16xf32>
    %119 = vector.shape_cast %118 : vector<16xf32> to vector<16x1xf32>
    %120 = arith.mulf %115, %104 : vector<16x64xf32>
    %121 = vector.broadcast %119 : vector<16x1xf32> to vector<16x64xf32>
    %122 = vector.broadcast %108 : vector<1x64xf32> to vector<16x64xf32>
    %123 = arith.mulf %121, %122 : vector<16x64xf32>
    %124 = arith.addf %120, %123 : vector<16x64xf32>
    %cst_55 = arith.constant dense<0.000000e+00> : vector<1x64xf32>
    %125 = tpu.matmul %112, %124, %cst_55 {dimension_numbers = #tpu.dot_dimension_numbers<[1], [0], [0], [1], [0, 0, 1, 1], [], []>} : vector<1x16xf32>, vector<16x64xf32>, vector<1x64xf32> -> vector<1x64xf32>
    %126 = arith.index_cast %c0_i32_49 : i32 to index
    %c0_56 = arith.constant 0 : index
    %127 = vector.load %arg18[%126, %c0_56] : memref<8x64xf32, #tpu.memory_space<vmem>>, vector<1x64xf32>
    tpu.vector_store %arg18[%126, %c0_56], %125 {strides = array<i32>} : memref<8x64xf32, #tpu.memory_space<vmem>>, vector<1x64xf32>,
    %c1_i32_57 = arith.constant 1 : i32
    %128 = arith.index_cast %c1_i32_57 : i32 to index
    %c0_58 = arith.constant 0 : index
    %129 = vector.load %arg14[%128, %c0_58] : memref<8x64xf32, #tpu.memory_space<vmem>>, vector<1x64xf32>
    %130 = arith.index_cast %c1_i32_57 : i32 to index
    %c0_59 = arith.constant 0 : index
    %131 = vector.load %arg15[%130, %c0_59] : memref<8x64xf32, #tpu.memory_space<vmem>>, vector<1x64xf32>
    %132 = arith.index_cast %c1_i32_57 : i32 to index
    %c0_60 = arith.constant 0 : index
    %133 = vector.load %arg16[%132, %c0_60] : memref<8x16xf32, #tpu.memory_space<vmem>>, vector<1x16xf32>
    %134 = arith.index_cast %c1_i32_57 : i32 to index
    %c0_61 = arith.constant 0 : index
    %135 = vector.load %arg17[%134, %c0_61] : memref<8x16xf32, #tpu.memory_space<vmem>>, vector<1x16xf32>
    %136 = vector.broadcast %129 : vector<1x64xf32> to vector<16x64xf32>
    %137 = arith.mulf %136, %98 : vector<16x64xf32>
    %138 = math.exp %137 : vector<16x64xf32>
    %139 = vector.broadcast %133 : vector<1x16xf32> to vector<16x16xf32>
    %140 = arith.mulf %103, %139 : vector<16x16xf32>
    %cst_62 = arith.constant dense<0.000000e+00> : vector<16xf32>
    %141 = vector.multi_reduction <add>, %140, %cst_62 [1] : vector<16x16xf32> to vector<16xf32>
    %142 = vector.shape_cast %141 : vector<16xf32> to vector<16x1xf32>
    %143 = arith.mulf %138, %124 : vector<16x64xf32>
    %144 = vector.broadcast %142 : vector<16x1xf32> to vector<16x64xf32>
    %145 = vector.broadcast %131 : vector<1x64xf32> to vector<16x64xf32>
    %146 = arith.mulf %144, %145 : vector<16x64xf32>
    %147 = arith.addf %143, %146 : vector<16x64xf32>
    %cst_63 = arith.constant dense<0.000000e+00> : vector<1x64xf32>
    %148 = tpu.matmul %135, %147, %cst_63 {dimension_numbers = #tpu.dot_dimension_numbers<[1], [0], [0], [1], [0, 0, 1, 1], [], []>} : vector<1x16xf32>, vector<16x64xf32>, vector<1x64xf32> -> vector<1x64xf32>
    %149 = arith.index_cast %c1_i32_57 : i32 to index
    %c0_64 = arith.constant 0 : index
    %150 = vector.load %arg18[%149, %c0_64] : memref<8x64xf32, #tpu.memory_space<vmem>>, vector<1x64xf32>
    tpu.vector_store %arg18[%149, %c0_64], %148 {strides = array<i32>} : memref<8x64xf32, #tpu.memory_space<vmem>>, vector<1x64xf32>,
    %c2_i32_65 = arith.constant 2 : i32
    %151 = arith.index_cast %c2_i32_65 : i32 to index
    %c0_66 = arith.constant 0 : index
    %152 = vector.load %arg14[%151, %c0_66] : memref<8x64xf32, #tpu.memory_space<vmem>>, vector<1x64xf32>
    %153 = arith.index_cast %c2_i32_65 : i32 to index
    %c0_67 = arith.constant 0 : index
    %154 = vector.load %arg15[%153, %c0_67] : memref<8x64xf32, #tpu.memory_space<vmem>>, vector<1x64xf32>
    %155 = arith.index_cast %c2_i32_65 : i32 to index
    %c0_68 = arith.constant 0 : index
    %156 = vector.load %arg16[%155, %c0_68] : memref<8x16xf32, #tpu.memory_space<vmem>>, vector<1x16xf32>
    %157 = arith.index_cast %c2_i32_65 : i32 to index
    %c0_69 = arith.constant 0 : index
    %158 = vector.load %arg17[%157, %c0_69] : memref<8x16xf32, #tpu.memory_space<vmem>>, vector<1x16xf32>
    %159 = vector.broadcast %152 : vector<1x64xf32> to vector<16x64xf32>
    %160 = arith.mulf %159, %98 : vector<16x64xf32>
    %161 = math.exp %160 : vector<16x64xf32>
    %162 = vector.broadcast %156 : vector<1x16xf32> to vector<16x16xf32>
    %163 = arith.mulf %103, %162 : vector<16x16xf32>
    %cst_70 = arith.constant dense<0.000000e+00> : vector<16xf32>
    %164 = vector.multi_reduction <add>, %163, %cst_70 [1] : vector<16x16xf32> to vector<16xf32>
    %165 = vector.shape_cast %164 : vector<16xf32> to vector<16x1xf32>
    %166 = arith.mulf %161, %147 : vector<16x64xf32>
    %167 = vector.broadcast %165 : vector<16x1xf32> to vector<16x64xf32>
    %168 = vector.broadcast %154 : vector<1x64xf32> to vector<16x64xf32>
    %169 = arith.mulf %167, %168 : vector<16x64xf32>
    %170 = arith.addf %166, %169 : vector<16x64xf32>
    %cst_71 = arith.constant dense<0.000000e+00> : vector<1x64xf32>
    %171 = tpu.matmul %158, %170, %cst_71 {dimension_numbers = #tpu.dot_dimension_numbers<[1], [0], [0], [1], [0, 0, 1, 1], [], []>} : vector<1x16xf32>, vector<16x64xf32>, vector<1x64xf32> -> vector<1x64xf32>
    %172 = arith.index_cast %c2_i32_65 : i32 to index
    %c0_72 = arith.constant 0 : index
    %173 = vector.load %arg18[%172, %c0_72] : memref<8x64xf32, #tpu.memory_space<vmem>>, vector<1x64xf32>
    tpu.vector_store %arg18[%172, %c0_72], %171 {strides = array<i32>} : memref<8x64xf32, #tpu.memory_space<vmem>>, vector<1x64xf32>,
    %c3_i32_73 = arith.constant 3 : i32
    %174 = arith.index_cast %c3_i32_73 : i32 to index
    %c0_74 = arith.constant 0 : index
    %175 = vector.load %arg14[%174, %c0_74] : memref<8x64xf32, #tpu.memory_space<vmem>>, vector<1x64xf32>
    %176 = arith.index_cast %c3_i32_73 : i32 to index
    %c0_75 = arith.constant 0 : index
    %177 = vector.load %arg15[%176, %c0_75] : memref<8x64xf32, #tpu.memory_space<vmem>>, vector<1x64xf32>
    %178 = arith.index_cast %c3_i32_73 : i32 to index
    %c0_76 = arith.constant 0 : index
    %179 = vector.load %arg16[%178, %c0_76] : memref<8x16xf32, #tpu.memory_space<vmem>>, vector<1x16xf32>
    %180 = arith.index_cast %c3_i32_73 : i32 to index
    %c0_77 = arith.constant 0 : index
    %181 = vector.load %arg17[%180, %c0_77] : memref<8x16xf32, #tpu.memory_space<vmem>>, vector<1x16xf32>
    %182 = vector.broadcast %175 : vector<1x64xf32> to vector<16x64xf32>
    %183 = arith.mulf %182, %98 : vector<16x64xf32>
    %184 = math.exp %183 : vector<16x64xf32>
    %185 = vector.broadcast %179 : vector<1x16xf32> to vector<16x16xf32>
    %186 = arith.mulf %103, %185 : vector<16x16xf32>
    %cst_78 = arith.constant dense<0.000000e+00> : vector<16xf32>
    %187 = vector.multi_reduction <add>, %186, %cst_78 [1] : vector<16x16xf32> to vector<16xf32>
    %188 = vector.shape_cast %187 : vector<16xf32> to vector<16x1xf32>
    %189 = arith.mulf %184, %170 : vector<16x64xf32>
    %190 = vector.broadcast %188 : vector<16x1xf32> to vector<16x64xf32>
    %191 = vector.broadcast %177 : vector<1x64xf32> to vector<16x64xf32>
    %192 = arith.mulf %190, %191 : vector<16x64xf32>
    %193 = arith.addf %189, %192 : vector<16x64xf32>
    %cst_79 = arith.constant dense<0.000000e+00> : vector<1x64xf32>
    %194 = tpu.matmul %181, %193, %cst_79 {dimension_numbers = #tpu.dot_dimension_numbers<[1], [0], [0], [1], [0, 0, 1, 1], [], []>} : vector<1x16xf32>, vector<16x64xf32>, vector<1x64xf32> -> vector<1x64xf32>
    %195 = arith.index_cast %c3_i32_73 : i32 to index
    %c0_80 = arith.constant 0 : index
    %196 = vector.load %arg18[%195, %c0_80] : memref<8x64xf32, #tpu.memory_space<vmem>>, vector<1x64xf32>
    tpu.vector_store %arg18[%195, %c0_80], %194 {strides = array<i32>} : memref<8x64xf32, #tpu.memory_space<vmem>>, vector<1x64xf32>,
    %c4_i32 = arith.constant 4 : i32
    %197 = arith.index_cast %c4_i32 : i32 to index
    %c0_81 = arith.constant 0 : index
    %198 = vector.load %arg14[%197, %c0_81] : memref<8x64xf32, #tpu.memory_space<vmem>>, vector<1x64xf32>
    %199 = arith.index_cast %c4_i32 : i32 to index
    %c0_82 = arith.constant 0 : index
    %200 = vector.load %arg15[%199, %c0_82] : memref<8x64xf32, #tpu.memory_space<vmem>>, vector<1x64xf32>
    %201 = arith.index_cast %c4_i32 : i32 to index
    %c0_83 = arith.constant 0 : index
    %202 = vector.load %arg16[%201, %c0_83] : memref<8x16xf32, #tpu.memory_space<vmem>>, vector<1x16xf32>
    %203 = arith.index_cast %c4_i32 : i32 to index
    %c0_84 = arith.constant 0 : index
    %204 = vector.load %arg17[%203, %c0_84] : memref<8x16xf32, #tpu.memory_space<vmem>>, vector<1x16xf32>
    %205 = vector.broadcast %198 : vector<1x64xf32> to vector<16x64xf32>
    %206 = arith.mulf %205, %98 : vector<16x64xf32>
    %207 = math.exp %206 : vector<16x64xf32>
    %208 = vector.broadcast %202 : vector<1x16xf32> to vector<16x16xf32>
    %209 = arith.mulf %103, %208 : vector<16x16xf32>
    %cst_85 = arith.constant dense<0.000000e+00> : vector<16xf32>
    %210 = vector.multi_reduction <add>, %209, %cst_85 [1] : vector<16x16xf32> to vector<16xf32>
    %211 = vector.shape_cast %210 : vector<16xf32> to vector<16x1xf32>
    %212 = arith.mulf %207, %193 : vector<16x64xf32>
    %213 = vector.broadcast %211 : vector<16x1xf32> to vector<16x64xf32>
    %214 = vector.broadcast %200 : vector<1x64xf32> to vector<16x64xf32>
    %215 = arith.mulf %213, %214 : vector<16x64xf32>
    %216 = arith.addf %212, %215 : vector<16x64xf32>
    %cst_86 = arith.constant dense<0.000000e+00> : vector<1x64xf32>
    %217 = tpu.matmul %204, %216, %cst_86 {dimension_numbers = #tpu.dot_dimension_numbers<[1], [0], [0], [1], [0, 0, 1, 1], [], []>} : vector<1x16xf32>, vector<16x64xf32>, vector<1x64xf32> -> vector<1x64xf32>
    %218 = arith.index_cast %c4_i32 : i32 to index
    %c0_87 = arith.constant 0 : index
    %219 = vector.load %arg18[%218, %c0_87] : memref<8x64xf32, #tpu.memory_space<vmem>>, vector<1x64xf32>
    tpu.vector_store %arg18[%218, %c0_87], %217 {strides = array<i32>} : memref<8x64xf32, #tpu.memory_space<vmem>>, vector<1x64xf32>,
    %c5_i32 = arith.constant 5 : i32
    %220 = arith.index_cast %c5_i32 : i32 to index
    %c0_88 = arith.constant 0 : index
    %221 = vector.load %arg14[%220, %c0_88] : memref<8x64xf32, #tpu.memory_space<vmem>>, vector<1x64xf32>
    %222 = arith.index_cast %c5_i32 : i32 to index
    %c0_89 = arith.constant 0 : index
    %223 = vector.load %arg15[%222, %c0_89] : memref<8x64xf32, #tpu.memory_space<vmem>>, vector<1x64xf32>
    %224 = arith.index_cast %c5_i32 : i32 to index
    %c0_90 = arith.constant 0 : index
    %225 = vector.load %arg16[%224, %c0_90] : memref<8x16xf32, #tpu.memory_space<vmem>>, vector<1x16xf32>
    %226 = arith.index_cast %c5_i32 : i32 to index
    %c0_91 = arith.constant 0 : index
    %227 = vector.load %arg17[%226, %c0_91] : memref<8x16xf32, #tpu.memory_space<vmem>>, vector<1x16xf32>
    %228 = vector.broadcast %221 : vector<1x64xf32> to vector<16x64xf32>
    %229 = arith.mulf %228, %98 : vector<16x64xf32>
    %230 = math.exp %229 : vector<16x64xf32>
    %231 = vector.broadcast %225 : vector<1x16xf32> to vector<16x16xf32>
    %232 = arith.mulf %103, %231 : vector<16x16xf32>
    %cst_92 = arith.constant dense<0.000000e+00> : vector<16xf32>
    %233 = vector.multi_reduction <add>, %232, %cst_92 [1] : vector<16x16xf32> to vector<16xf32>
    %234 = vector.shape_cast %233 : vector<16xf32> to vector<16x1xf32>
    %235 = arith.mulf %230, %216 : vector<16x64xf32>
    %236 = vector.broadcast %234 : vector<16x1xf32> to vector<16x64xf32>
    %237 = vector.broadcast %223 : vector<1x64xf32> to vector<16x64xf32>
    %238 = arith.mulf %236, %237 : vector<16x64xf32>
    %239 = arith.addf %235, %238 : vector<16x64xf32>
    %cst_93 = arith.constant dense<0.000000e+00> : vector<1x64xf32>
    %240 = tpu.matmul %227, %239, %cst_93 {dimension_numbers = #tpu.dot_dimension_numbers<[1], [0], [0], [1], [0, 0, 1, 1], [], []>} : vector<1x16xf32>, vector<16x64xf32>, vector<1x64xf32> -> vector<1x64xf32>
    %241 = arith.index_cast %c5_i32 : i32 to index
    %c0_94 = arith.constant 0 : index
    %242 = vector.load %arg18[%241, %c0_94] : memref<8x64xf32, #tpu.memory_space<vmem>>, vector<1x64xf32>
    tpu.vector_store %arg18[%241, %c0_94], %240 {strides = array<i32>} : memref<8x64xf32, #tpu.memory_space<vmem>>, vector<1x64xf32>,
    %c6_i32 = arith.constant 6 : i32
    %243 = arith.index_cast %c6_i32 : i32 to index
    %c0_95 = arith.constant 0 : index
    %244 = vector.load %arg14[%243, %c0_95] : memref<8x64xf32, #tpu.memory_space<vmem>>, vector<1x64xf32>
    %245 = arith.index_cast %c6_i32 : i32 to index
    %c0_96 = arith.constant 0 : index
    %246 = vector.load %arg15[%245, %c0_96] : memref<8x64xf32, #tpu.memory_space<vmem>>, vector<1x64xf32>
    %247 = arith.index_cast %c6_i32 : i32 to index
    %c0_97 = arith.constant 0 : index
    %248 = vector.load %arg16[%247, %c0_97] : memref<8x16xf32, #tpu.memory_space<vmem>>, vector<1x16xf32>
    %249 = arith.index_cast %c6_i32 : i32 to index
    %c0_98 = arith.constant 0 : index
    %250 = vector.load %arg17[%249, %c0_98] : memref<8x16xf32, #tpu.memory_space<vmem>>, vector<1x16xf32>
    %251 = vector.broadcast %244 : vector<1x64xf32> to vector<16x64xf32>
    %252 = arith.mulf %251, %98 : vector<16x64xf32>
    %253 = math.exp %252 : vector<16x64xf32>
    %254 = vector.broadcast %248 : vector<1x16xf32> to vector<16x16xf32>
    %255 = arith.mulf %103, %254 : vector<16x16xf32>
    %cst_99 = arith.constant dense<0.000000e+00> : vector<16xf32>
    %256 = vector.multi_reduction <add>, %255, %cst_99 [1] : vector<16x16xf32> to vector<16xf32>
    %257 = vector.shape_cast %256 : vector<16xf32> to vector<16x1xf32>
    %258 = arith.mulf %253, %239 : vector<16x64xf32>
    %259 = vector.broadcast %257 : vector<16x1xf32> to vector<16x64xf32>
    %260 = vector.broadcast %246 : vector<1x64xf32> to vector<16x64xf32>
    %261 = arith.mulf %259, %260 : vector<16x64xf32>
    %262 = arith.addf %258, %261 : vector<16x64xf32>
    %cst_100 = arith.constant dense<0.000000e+00> : vector<1x64xf32>
    %263 = tpu.matmul %250, %262, %cst_100 {dimension_numbers = #tpu.dot_dimension_numbers<[1], [0], [0], [1], [0, 0, 1, 1], [], []>} : vector<1x16xf32>, vector<16x64xf32>, vector<1x64xf32> -> vector<1x64xf32>
    %264 = arith.index_cast %c6_i32 : i32 to index
    %c0_101 = arith.constant 0 : index
    %265 = vector.load %arg18[%264, %c0_101] : memref<8x64xf32, #tpu.memory_space<vmem>>, vector<1x64xf32>
    tpu.vector_store %arg18[%264, %c0_101], %263 {strides = array<i32>} : memref<8x64xf32, #tpu.memory_space<vmem>>, vector<1x64xf32>,
    %c7_i32 = arith.constant 7 : i32
    %266 = arith.index_cast %c7_i32 : i32 to index
    %c0_102 = arith.constant 0 : index
    %267 = vector.load %arg14[%266, %c0_102] : memref<8x64xf32, #tpu.memory_space<vmem>>, vector<1x64xf32>
    %268 = arith.index_cast %c7_i32 : i32 to index
    %c0_103 = arith.constant 0 : index
    %269 = vector.load %arg15[%268, %c0_103] : memref<8x64xf32, #tpu.memory_space<vmem>>, vector<1x64xf32>
    %270 = arith.index_cast %c7_i32 : i32 to index
    %c0_104 = arith.constant 0 : index
    %271 = vector.load %arg16[%270, %c0_104] : memref<8x16xf32, #tpu.memory_space<vmem>>, vector<1x16xf32>
    %272 = arith.index_cast %c7_i32 : i32 to index
    %c0_105 = arith.constant 0 : index
    %273 = vector.load %arg17[%272, %c0_105] : memref<8x16xf32, #tpu.memory_space<vmem>>, vector<1x16xf32>
    %274 = vector.broadcast %267 : vector<1x64xf32> to vector<16x64xf32>
    %275 = arith.mulf %274, %98 : vector<16x64xf32>
    %276 = math.exp %275 : vector<16x64xf32>
    %277 = vector.broadcast %271 : vector<1x16xf32> to vector<16x16xf32>
    %278 = arith.mulf %103, %277 : vector<16x16xf32>
    %cst_106 = arith.constant dense<0.000000e+00> : vector<16xf32>
    %279 = vector.multi_reduction <add>, %278, %cst_106 [1] : vector<16x16xf32> to vector<16xf32>
    %280 = vector.shape_cast %279 : vector<16xf32> to vector<16x1xf32>
    %281 = arith.mulf %276, %262 : vector<16x64xf32>
    %282 = vector.broadcast %280 : vector<16x1xf32> to vector<16x64xf32>
    %283 = vector.broadcast %269 : vector<1x64xf32> to vector<16x64xf32>
    %284 = arith.mulf %282, %283 : vector<16x64xf32>
    %285 = arith.addf %281, %284 : vector<16x64xf32>
    %cst_107 = arith.constant dense<0.000000e+00> : vector<1x64xf32>
    %286 = tpu.matmul %273, %285, %cst_107 {dimension_numbers = #tpu.dot_dimension_numbers<[1], [0], [0], [1], [0, 0, 1, 1], [], []>} : vector<1x16xf32>, vector<16x64xf32>, vector<1x64xf32> -> vector<1x64xf32>
    %287 = arith.index_cast %c7_i32 : i32 to index
    %c0_108 = arith.constant 0 : index
    %288 = vector.load %arg18[%287, %c0_108] : memref<8x64xf32, #tpu.memory_space<vmem>>, vector<1x64xf32>
    tpu.vector_store %arg18[%287, %c0_108], %286 {strides = array<i32>} : memref<8x64xf32, #tpu.memory_space<vmem>>, vector<1x64xf32>,
    %c8_i32 = arith.constant 8 : i32
    %c0_109 = arith.constant 0 : index
    %c0_110 = arith.constant 0 : index
    %289 = vector.load %arg18[%c0_109, %c0_110] : memref<8x64xf32, #tpu.memory_space<vmem>>, vector<8x64xf32>
    %c0_111 = arith.constant 0 : index
    %c0_112 = arith.constant 0 : index
    %290 = vector.load %arg13[%c0_111, %c0_112] : memref<8x64xf32, #tpu.memory_space<vmem>>, vector<8x64xf32>
    %c0_113 = arith.constant 0 : index
    %c0_114 = arith.constant 0 : index
    %c0_115 = arith.constant 0 : index
    %291 = vector.load %arg10[%c0_113, %c0_114, %c0_115] : memref<1x1x64xf32, #tpu.memory_space<vmem>>, vector<1x1x64xf32>
    %292 = vector.shape_cast %291 : vector<1x1x64xf32> to vector<1x64xf32>
    %293 = vector.broadcast %292 : vector<1x64xf32> to vector<8x64xf32>
    %294 = arith.mulf %290, %293 : vector<8x64xf32>
    %295 = arith.addf %289, %294 : vector<8x64xf32>
    %296 = arith.negf %24 : vector<8x64xf32>
    %297 = math.exp %296 : vector<8x64xf32>
    %cst_116 = arith.constant 1.000000e+00 : f32
    %298 = vector.broadcast %cst_116 : f32 to vector<8x64xf32>
    %299 = arith.addf %298, %297 : vector<8x64xf32>
    %300 = arith.divf %298, %299 : vector<8x64xf32>
    %301 = arith.mulf %24, %300 : vector<8x64xf32>
    %302 = arith.mulf %295, %301 : vector<8x64xf32>
    %303 = arith.truncf %302 : vector<8x64xf32> to vector<8x64xbf16>
    %c0_117 = arith.constant 0 : index
    %c0_118 = arith.constant 0 : index
    %c0_119 = arith.constant 0 : index
    %304 = vector.load %arg11[%c0_117, %c0_118, %c0_119] : memref<1x64x128xbf16, #tpu.memory_space<vmem>>, vector<1x64x128xbf16>
    %305 = vector.shape_cast %304 : vector<1x64x128xbf16> to vector<64x128xbf16>
    %cst_120 = arith.constant dense<0.000000e+00> : vector<8x128xf32>
    %306 = tpu.matmul %303, %305, %cst_120 {dimension_numbers = #tpu.dot_dimension_numbers<[1], [0], [0], [1], [0, 0, 1, 1], [], []>} : vector<8x64xbf16>, vector<64x128xbf16>, vector<8x128xf32> -> vector<8x128xf32>
    %307 = arith.addf %4, %306 : vector<8x128xf32>
    %308 = vector.shape_cast %307 : vector<8x128xf32> to vector<1x8x128xf32>
    %c0_121 = arith.constant 0 : index
    %c0_122 = arith.constant 0 : index
    %c0_123 = arith.constant 0 : index
    %309 = vector.load %arg12[%c0_121, %c0_122, %c0_123] : memref<1x8x128xf32, #tpu.memory_space<vmem>>, vector<1x8x128xf32>
    tpu.vector_store %arg12[%c0_121, %c0_122, %c0_123], %308 {strides = array<i32>} : memref<1x8x128xf32, #tpu.memory_space<vmem>>, vector<1x8x128xf32>,
    return
  }
  func.func @transform_0(%arg0: i32, %arg1: i32) -> (i32, i32, i32) {
    %c0_i32 = arith.constant 0 : i32
    %c0_i32_0 = arith.constant 0 : i32
    %c0_i32_1 = arith.constant 0 : i32
    return %arg0, %c0_i32, %c0_i32_0 : i32, i32, i32
  }
  func.func @transform_1(%arg0: i32, %arg1: i32) -> (i32, i32, i32) {
    %c0_i32 = arith.constant 0 : i32
    %c0_i32_0 = arith.constant 0 : i32
    %c0_i32_1 = arith.constant 0 : i32
    return %arg1, %c0_i32, %c0_i32_0 : i32, i32, i32
  }
  func.func @transform_2(%arg0: i32, %arg1: i32) -> (i32, i32, i32) {
    %c0_i32 = arith.constant 0 : i32
    %c0_i32_0 = arith.constant 0 : i32
    %c0_i32_1 = arith.constant 0 : i32
    return %arg1, %c0_i32, %c0_i32_0 : i32, i32, i32
  }
  func.func @transform_3(%arg0: i32, %arg1: i32) -> (i32, i32, i32) {
    %c0_i32 = arith.constant 0 : i32
    %c0_i32_0 = arith.constant 0 : i32
    %c0_i32_1 = arith.constant 0 : i32
    return %arg1, %c0_i32, %c0_i32_0 : i32, i32, i32
  }
  func.func @transform_4(%arg0: i32, %arg1: i32) -> (i32, i32, i32) {
    %c0_i32 = arith.constant 0 : i32
    %c0_i32_0 = arith.constant 0 : i32
    %c0_i32_1 = arith.constant 0 : i32
    return %arg1, %c0_i32, %c0_i32_0 : i32, i32, i32
  }
  func.func @transform_5(%arg0: i32, %arg1: i32) -> (i32, i32, i32) {
    %c0_i32 = arith.constant 0 : i32
    %c0_i32_0 = arith.constant 0 : i32
    %c0_i32_1 = arith.constant 0 : i32
    return %arg1, %c0_i32, %c0_i32_0 : i32, i32, i32
  }
  func.func @transform_6(%arg0: i32, %arg1: i32) -> (i32, i32, i32) {
    %c0_i32 = arith.constant 0 : i32
    %c0_i32_0 = arith.constant 0 : i32
    %c0_i32_1 = arith.constant 0 : i32
    return %arg1, %c0_i32, %c0_i32_0 : i32, i32, i32
  }
  func.func @transform_7(%arg0: i32, %arg1: i32) -> (i32, i32, i32) {
    %c0_i32 = arith.constant 0 : i32
    %c0_i32_0 = arith.constant 0 : i32
    %c0_i32_1 = arith.constant 0 : i32
    return %arg1, %c0_i32, %c0_i32_0 : i32, i32, i32
  }
  func.func @transform_8(%arg0: i32, %arg1: i32) -> (i32, i32, i32) {
    %c0_i32 = arith.constant 0 : i32
    %c0_i32_0 = arith.constant 0 : i32
    %c0_i32_1 = arith.constant 0 : i32
    return %arg1, %c0_i32, %c0_i32_0 : i32, i32, i32
  }
  func.func @transform_9(%arg0: i32, %arg1: i32) -> (i32, i32, i32) {
    %c0_i32 = arith.constant 0 : i32
    %c0_i32_0 = arith.constant 0 : i32
    %c0_i32_1 = arith.constant 0 : i32
    return %arg1, %c0_i32, %c0_i32_0 : i32, i32, i32
  }
  func.func @transform_10(%arg0: i32, %arg1: i32) -> (i32, i32, i32) {
    %c0_i32 = arith.constant 0 : i32
    %c0_i32_0 = arith.constant 0 : i32
    %c0_i32_1 = arith.constant 0 : i32
    return %arg0, %c0_i32, %c0_i32_0 : i32, i32, i32
  }
}

</mosaic_0001>

<bundles_post_ra>
// kernel: tpu_custom_call.1
= control target key start
LH: loop header
LB: loop body
LE: loop exit
PB: predicated region body
PF: predicated region fallthrough
CT: control target
= control target key end

     0   :  { %s3493_s0 = inlined_call_operand.vmem [shape: f32[2,8,128], index: 0, kind: input, shape index: {}]   ;;  %s3494_s1 = inlined_call_operand.vmem [shape: f32[2,1,128], index: 1, kind: input, shape index: {}]   ;;  %s3495_s2 = inlined_call_operand.hbm [shape: bf16[2,128,128], index: 2, kind: input, shape index: {}]   ;;  %s3496_s3 = inlined_call_operand.hbm [shape: f32[2,4,64], index: 3, kind: input, shape index: {}]   ;;  %s3497_s4 = inlined_call_operand.hbm [shape: f32[2,1,64], index: 4, kind: input, shape index: {}]   ;;  %s3498_s5 = inlined_call_operand.vmem [shape: bf16[2,64,34], index: 5, kind: input, shape index: {}]   ;;  %s3499_s6 = inlined_call_operand.hbm [shape: f32[2,2,64], index: 6, kind: input, shape index: {}]   ;;  %s3500_s7 = inlined_call_operand.vmem [shape: f32[2,16,64], index: 7, kind: input, shape index: {}]   ;;  %s3501_s8 = inlined_call_operand.hbm [shape: f32[2,1,64], index: 8, kind: input, shape index: {}]   ;;  %s3502_s9 = inlined_call_operand.vmem [shape: bf16[2,64,128], index: 9, kind: input, shape index: {}]   ;;  %s3503_s10 = inlined_call_operand.hbm [shape: f32[2,8,128], index: 10, kind: output, shape index: {}]  }
   0x1   :  { %3519 = sst [smem:[#allocation34_spill]] %s3494_s1 }
   0x2   :  { %3520 = sst [smem:[#allocation35_spill]] %s3495_s2 }
   0x3   :  { %3521 = sst [smem:[#allocation36_spill]] %s3496_s3 }
   0x4   :  { %3522 = sst [smem:[#allocation37_spill]] %s3497_s4 }
   0x5   :  { %3523 = sst [smem:[#allocation38_spill]] %s3498_s5 }
   0x6   :  { %3524 = sst [smem:[#allocation39_spill]] %s3499_s6 }
   0x7   :  { %3525 = sst [smem:[#allocation40_spill]] %s3500_s7 }
   0x8   :  { %3526 = sst [smem:[#allocation41_spill]] %s3501_s8 }
   0x9   :  { %3527 = sst [smem:[#allocation42_spill]] %s3502_s9 }
   0xa   :  { %3528 = sst [smem:[#allocation43_spill]] %s3503_s10 }
   0xb   :  { %15 = vsyncpa [#allocation9], 0 }
   0xc   :  { %17 = vsyncpa [#allocation9 + $0x1], 0 }
   0xd   :  { %18 = vsyncpa [#allocation12], 0 }
   0xe   :  { %20 = vsyncpa [#allocation12 + $0x1], 0 }
   0xf   :  { %21 = vsyncpa [#allocation15], 0 }
  0x10   :  { %23 = vsyncpa [#allocation15 + $0x1], 0 }
  0x11   :  { %24 = vsyncpa [#allocation10], 0 }
  0x12   :  { %26 = vsyncpa [#allocation10 + $0x1], 0  ;;  %s2981_s13 = smov 0   ;;  %s2983_s14 = smov 0  }
  0x13   :  { %s2985_s15 = smov 0   ;;  %s2987_s16 = smov 0  }
  0x14   :  { %s2989_s17 = smov 0   ;;  %s2991_s18 = smov 0  }
  0x15   :  { %s2993_s19 = smov 0   ;;  %s2995_s20 = smov 0  }
  0x16   :  { %s2997_s21 = smov 0   ;;  %s2999_s22 = smov 0  }
  0x17   :  { %s3001_s23 = smov 0  }
  0x18 LB: > { %3529 = sst [smem:[#allocation22_spill]] %s2871_s13  ;;  %s3035_s24 = sadd.s32 4294967295, %s2911_s23   ;;  %s2911_s23 = sphi %s3001_s23, %s32_s23   ;;  %s2907_s22 = sphi %s2999_s22, %s3573_s22   ;;  %s2903_s21 = sphi %s2997_s21, %s3572_s21   ;;  %s2899_s20 = sphi %s2995_s20, %s3571_s20   ;;  %s2895_s19 = sphi %s2993_s19, %s3570_s19   ;;  %s2891_s18 = sphi %s2991_s18, %s3569_s18   ;;  %s2887_s17 = sphi %s2989_s17, %s3577_s17   ;;  %s2883_s16 = sphi %s2987_s16, %s3576_s16   ;;  %s2879_s15 = sphi %s2985_s15, %s3567_s15   ;;  %s2875_s14 = sphi %s2983_s14, %s3575_s14   ;;  %s2871_s13 = sphi %s2981_s13, %s3574_s13  }
  0x19   : > { %3530 = sst [smem:[#allocation23_spill]] %s2879_s15  ;;  %s2210_s25 = sadd.s32 4294967294, %s2911_s23  }
  0x1a   : > { %3531 = sst [smem:[#allocation24_spill]] %s2891_s18  ;;  %s41_s26 = sadd.s32 1, %s2903_s21 }
  0x1b   : > { %3532 = sst [smem:[#allocation25_spill]] %s2903_s21  ;;  %s44_s27 = sadd.s32 1, %s2907_s22 }
  0x1c   : > { %3533 = sst [smem:[#allocation26_spill]] %s2907_s22  ;;  %p42_p0 = scmp.ge.s32.totalorder %s41_s26, 2 }
  0x1d   : > { %3534 = sst [smem:[#allocation27_spill]] %s2911_s23  ;;  %s103_s28 = sadd.s32 1, %s2891_s18 }
  0x1e   : > { %p110_p1 = scmp.ne.s32.totalorder %s2891_s18, %s2887_s17  ;;  %p111_p2 = scmp.eq.s32.totalorder %s2911_s23, 0 }
  0x1f   : > { %s3579_s26 = smov (%p42_p0, %s41_s26), 0  ;;  %s3581_s27 = smov (!%p42_p0, %s44_s27), %s2907_s22 }
  0x20   : > { %3535 = sst [smem:[#allocation28_spill]] %s3579_s26  ;;  %s100_s29 = ssub.s32 %s2903_s21, %s3579_s26 }
  0x21   : > { %p3049_p3 = por %p111_p2, %p110_p1  ;;  %p46_p4 = scmp.ge.s32.totalorder %s3581_s27, 2 }
  0x22   : > { %p101_p5 = scmp.eq.s32.totalorder %s100_s29, 0  ;;  %p116_p6 = scmp.ne.s32.totalorder %s2887_s17, %s2883_s16 }
  0x23   : > { %p117_p7 = scmp.eq.s32.totalorder %s3035_s24, 0  ;;  %s3583_s27 = smov (%p46_p4, %s3581_s27), 0 }
  0x24   : > { %3537 = sst [smem:[#allocation29_spill]] %s3583_s27  ;;  %s308_s26 = ssub.s32 %s2907_s22, %s3583_s27 }
  0x25   : > { %s3058_s11 = scalar_select %p101_p5, %s2891_s18, %s103_s28  }
  0x26   : > { %p3060_p8 = por %p117_p7, %p116_p6  ;;  %p309_p9 = scmp.eq.s32.totalorder %s308_s26, 0 }
  0x27   : > { %3538 = sst [smem:[#allocation30_spill]] %s3058_s11  ;;  %s311_s10 = sadd.s32 1, %s2879_s15 }
  0x28   : > { %p321_p10 = scmp.ne.s32.totalorder %s2879_s15, %s2875_s14  ;;  %p322_p11 = scmp.eq.s32.totalorder %s3035_s24, 3 }
  0x29   : > { %s3071_s16 = scalar_select %p309_p9, %s2879_s15, %s311_s10  }
  0x2a   : > { %p3073_p12 = por %p322_p11, %p321_p10  ;;  %p327_p13 = scmp.ne.s32.totalorder %s2875_s14, %s2871_s13 }
  0x2b   : > { %3540 = sst [smem:[#allocation31_spill]] %s3071_s16  ;;  %p328_p0 = scmp.eq.s32.totalorder %s2210_s25, 3 }
  0x2c   : > { %s3541_s29 = scalar_select %p3073_p12, 1, 0 }
  0x2d   : > { %p2484_p1 = scmp.lt.s32.totalorder %s2911_s23, 4  ;;  %s3081_s28 = sand.u32 1, %s2891_s18  }
  0x2e   : > { %3542 = sst [smem:[#allocation32_spill]] %s3541_s29  ;;  %p3083_p2 = por %p328_p0, %p327_p13 }
  0x2f   : > { %s3514_s26 = sand.u32 1, %s2911_s23   ;;  %p3090_p4 = pnand %p2484_p1, %p3049_p3 }
  0x30   : > { %s3543_s27 = scalar_select %p3083_p2, 1, 0 }
  0x31   : > { %s2216_s22 = sshll.u32 %s3081_s28, 2  ;;  %s2217_s11 = sshll.u32 %s2903_s21, 6 }
  0x32   : > { %3544 = sst [smem:[#allocation33_spill]] %s3543_s27  ;;  %s386_s18 = scalar_lea.vmem [#allocation11], %s2216_s22 }
  0x33   : > { %s3546_s3 = sld [smem:[#allocation36_spill]]  ;;  %s393_s13 = sshll.u32 %s386_s18, 4  ;;  %s394_s13 = int_to_ptr.vmem [resolvable:$true] %s393_s13 }
  0x34   : > { %p2222_p5 = scmp.ge.s32.totalorder %s2911_s23, 1  ;;  %s3102_s29 = scalar_lea.sflag [#allocation12], %s3514_s26 }
  0x35   : > { %p3106_p6 = pneg %p3090_p4  ;;  %s2656_s27 = scalar_lea.vmem %s394_s13, 64 }
  0x36   : > { %p2657_p3 = scmp.ne.s32.totalorder %s394_s13, %s2656_s27  ;;  %s2913_s15 = smov [#allocation11]  }
  0x38   : > { %p2659_p7 = pnand %p2657_p3, %p3106_p6 }
  0x39   : > { %s391_s25 = scalar_lea.hbm %s3546_s3, %s2217_s11  ;;  %s2661_s11 = sshll.u32 %s2913_s15, 4  ;;  %s2662_s11 = int_to_ptr.vmem [resolvable:$false] %s2661_s11 }
  0x3a   : > { %p2660_p9 = pneg %p2659_p7  ;;  %s2663_s18 = scalar_lea.vmem %s2662_s11, 128 }
  0x3b   : > { %p2664_p10 = scmp.lt.s32.totalorder %s394_s13, %s2662_s11  ;;  %p2665_p11 = scmp.lt.s32.totalorder %s2663_s18, %s2656_s27 }
  0x3d   : > { %p2666_p13 = por %p2665_p11, %p2664_p10 }
  0x3f   : > { %p2667_p0 = pnand %p2666_p13, %p2660_p9 }
  0x41   : > { %2670 = shalt.err (!%p2667_p0)
}
  0x42   : > { %2470 = dma.hbm_to_vmem [thread:$0]  (!%p3090_p4), %s391_s25, 64, %s394_s13, %s3102_s29  }
  0x43   : > { %p474_p1 = scmp.lt.s32.totalorder %s2911_s23, 5  ;;  %s2219_s22 = sshll.u32 %s3081_s28, 1 }
  0x44   : > { %s2220_s16 = sshll.u32 %s2903_s21, 5  ;;  %s3549_s6 = sld [smem:[#allocation39_spill]] }
  0x45   : > { %p3120_p3 = pnand %p2222_p5, %p474_p1  ;;  %s429_s26 = scalar_lea.vmem [#allocation14], %s2219_s22 }
  0x46   : > { %s436_s3 = sshll.u32 %s429_s26, 4  ;;  %s3550_s9 = sand.u32 1, %s2911_s23   ;;  %s437_s3 = int_to_ptr.vmem [resolvable:$true] %s436_s3 }
  0x47   : > { %s3129_s7 = scalar_lea.sflag [#allocation15], %s3550_s9  ;;  %s2684_s5 = scalar_lea.vmem %s437_s3, 32 }
  0x48   : > { %p2685_p7 = scmp.ne.s32.totalorder %s437_s3, %s2684_s5  ;;  %s2914_s13 = smov [#allocation14]  }
  0x49   : > { %s2689_s25 = sshll.u32 %s2914_s13, 4  ;;  %s2690_s25 = int_to_ptr.vmem [resolvable:$false] %s2689_s25 }
  0x4a   : > { %s434_s18 = scalar_lea.hbm %s3549_s6, %s2220_s16  ;;  %p2687_p9 = pnand %p2685_p7, %p3106_p6 }
  0x4b   : > { %s2691_s1 = scalar_lea.vmem %s2690_s25, 64  ;;  %p2692_p5 = scmp.lt.s32.totalorder %s437_s3, %s2690_s25 }
  0x4c   : > { %p2688_p10 = pneg %p2687_p9  ;;  %p2693_p11 = scmp.lt.s32.totalorder %s2691_s1, %s2684_s5 }
  0x4e   : > { %p2694_p13 = por %p2693_p11, %p2692_p5 }
  0x50   : > { %p2695_p0 = pnand %p2694_p13, %p2688_p10 }
  0x52   : > { %2698 = shalt.err (!%p2695_p0)
}
  0x53   : > { %2476 = dma.hbm_to_vmem [thread:$0]  (!%p3090_p4), %s434_s18, 32, %s437_s3, %s3129_s7  }
  0x54   : > { %s2213_s9 = sshll.u32 %s3081_s28, 6  ;;  %s2298_s26 = sshll.u32 %s2903_s21, 10 }
  0x55   : > { %s3551_s2 = sld [smem:[#allocation35_spill]]  ;;  %s365_s11 = scalar_lea.vmem [#allocation8], %s2213_s9 }
  0x56   : > { %s372_s13 = sshll.u32 %s365_s11, 4  ;;  %s362_s1 = scalar_lea.sflag [#allocation9], %s3081_s28  ;;  %s373_s13 = int_to_ptr.vmem [resolvable:$true] %s372_s13 }
  0x57   : > { %s2712_s5 = scalar_lea.vmem %s373_s13, 1024  ;;  %s2915_s25 = smov [#allocation8]  }
  0x58   : > { %p2713_p1 = scmp.ne.s32.totalorder %s373_s13, %s2712_s5  ;;  %s2717_s6 = sshll.u32 %s2915_s25, 4  ;;  %s2718_s6 = int_to_ptr.vmem [resolvable:$false] %s2717_s6 }
  0x59   : > { %s2719_s23 = scalar_lea.vmem %s2718_s6, 2048  ;;  %p2720_p10 = scmp.lt.s32.totalorder %s373_s13, %s2718_s6 }
  0x5a   : > { %p2715_p7 = pnand %p2713_p1, %p3106_p6  ;;  %p2721_p5 = scmp.lt.s32.totalorder %s2719_s23, %s2712_s5 }
  0x5b   : > { %s371_s27 = scalar_lea.hbm %s3551_s2, %s2298_s26 }
  0x5c   : > { %p2716_p9 = pneg %p2715_p7  ;;  %p2722_p11 = por %p2721_p5, %p2720_p10 }
  0x5e   : > { %p2723_p13 = pnand %p2722_p11, %p2716_p9 }
  0x60   : > { %2726 = shalt.err (!%p2723_p13)
}
  0x61   : > { %s2916_s3 = smov 64   ;;  %s2917_s18 = smov 4  }
  0x62   : > { %2467 = dma.hbm_to_vmem [thread:$0]  (!%p3090_p4), %s371_s27, 1024, %s373_s13, %s362_s1, %s2916_s3, %s2916_s3, %s2917_s18  }
  0x63   : > { %s2218_s9 = sshll.u32 %s2903_s21, 4  ;;  %s3552_s4 = sld [smem:[#allocation37_spill]] }
  0x64   : > { %s403_s11 = scalar_lea.vmem [#allocation13], %s3081_s28  ;;  %s2918_s23 = smov [#allocation13]  }
  0x65   : > { %s410_s25 = sshll.u32 %s403_s11, 4  ;;  %s2745_s5 = sshll.u32 %s2918_s23, 4  ;;  %s411_s25 = int_to_ptr.vmem [resolvable:$true] %s410_s25  ;;  %s2746_s5 = int_to_ptr.vmem [resolvable:$false] %s2745_s5 }
  0x66   : > { %s2740_s6 = scalar_lea.vmem %s411_s25, 16  ;;  %s2747_s2 = scalar_lea.vmem %s2746_s5, 32 }
  0x67   : > { %p2741_p0 = scmp.ne.s32.totalorder %s411_s25, %s2740_s6  ;;  %p2748_p9 = scmp.lt.s32.totalorder %s411_s25, %s2746_s5 }
  0x68   : > { %p2749_p10 = scmp.lt.s32.totalorder %s2747_s2, %s2740_s6 }
  0x69   : > { %s408_s16 = scalar_lea.hbm %s3552_s4, %s2218_s9  ;;  %p2743_p1 = pnand %p2741_p0, %p3106_p6 }
  0x6a   : > { %p2750_p5 = por %p2749_p10, %p2748_p9 }
  0x6b   : > { %p2744_p7 = pneg %p2743_p1 }
  0x6d   : > { %p2751_p11 = pnand %p2750_p5, %p2744_p7 }
  0x6f   : > { %2754 = shalt.err (!%p2751_p11)
}
  0x70   : > { %2473 = dma.hbm_to_vmem [thread:$0]  (!%p3090_p4), %s408_s16, 16, %s411_s25, %s3102_s29  }
  0x71   : > { %s3553_s8 = sld [smem:[#allocation41_spill]]  ;;  %s454_s3 = scalar_lea.vmem [#allocation16], %s3081_s28 }
  0x72   : > { %s461_s18 = sshll.u32 %s454_s3, 4  ;;  %s2919_s2 = smov [#allocation16]   ;;  %s462_s18 = int_to_ptr.vmem [resolvable:$true] %s461_s18 }
  0x73   : > { %s2768_s26 = scalar_lea.vmem %s462_s18, 16  ;;  %s2773_s22 = sshll.u32 %s2919_s2, 4  ;;  %s2774_s22 = int_to_ptr.vmem [resolvable:$false] %s2773_s22 }
  0x74   : > { %p2769_p13 = scmp.ne.s32.totalorder %s462_s18, %s2768_s26  ;;  %s2775_s11 = scalar_lea.vmem %s2774_s22, 32 }
  0x75   : > { %p2776_p7 = scmp.lt.s32.totalorder %s462_s18, %s2774_s22  ;;  %p2777_p9 = scmp.lt.s32.totalorder %s2775_s11, %s2768_s26 }
  0x76   : > { %p2771_p0 = pnand %p2769_p13, %p3106_p6 }
  0x77   : > { %s459_s1 = scalar_lea.hbm %s3553_s8, %s2218_s9  ;;  %p2778_p10 = por %p2777_p9, %p2776_p7 }
  0x78   : > { %p2772_p1 = pneg %p2771_p0 }
  0x7a   : > { %p2779_p5 = pnand %p2778_p10, %p2772_p1 }
  0x7c   : > { %2782 = shalt.err (!%p2779_p5)
}
  0x7d   : > { %2479 = dma.hbm_to_vmem [thread:$0]  (!%p3090_p4), %s459_s1, 16, %s462_s18, %s3129_s7  }
  0x7e   : > { %478 = sbr.rel (%p3120_p3) target bundleno = 1519 (0x5ef), region = 60  ;;  %s3168_s29 = sand.u32 (!%p3120_p3), 1, %s2887_s17  }
  0x7f   : > { %s2223_s28 = sshll.u32 (!%p3120_p3), %s3168_s29, 6  ;;  %s481_s30 = scalar_lea.sflag (!%p3120_p3), [#allocation9], %s3168_s29 }
  0x80   : > { %s3172_s9 = scalar_lea.vmem (!%p3120_p3), [#allocation8], %s2223_s28 }
  0x83   : > { %2854 = dma.done.wait (%p3060_p8), %s481_s30, 1024  }
  0x84   : > { %2856 = vsyncadd (%p3060_p8), %s481_s30, 4294966272  ;;  %s489_s7 = sand.u32 1, %s3035_s24   ;;  %s2224_s10 = sshll.u32 %s3168_s29, 2 }
  0x85   : > { %s490_s15 = scalar_lea.sflag [#allocation12], %s489_s7  ;;  %s3180_s16 = scalar_lea.vmem [#allocation11], %s2224_s10 }
  0x86   : > { %2858 = dma.done.wait (%p3060_p8), %s490_s15, 80  }
  0x87   : > { %2860 = vsyncadd (%p3060_p8), %s490_s15, 4294967216  ;;  %s2225_s25 = sshll.u32 %s3168_s29, 1  ;;  %s507_s23 = scalar_lea.sflag [#allocation15], %s489_s7 }
  0x88   : > { %s3188_s5 = scalar_lea.vmem [#allocation14], %s2225_s25 }
  0x89   : > { %2862 = dma.done.wait (%p3060_p8), %s507_s23, 48  }
  0x8a   : > { %2864 = vsyncadd (%p3060_p8), %s507_s23, 4294967248  ;;  %s3517_s24 = sand.u32 1, %s2875_s14   ;;  %p595_p4 = scmp.lt.s32.totalorder %s2899_s20, 1 }
  0x8b   : > { %s2226_s27 = sshll.u32 %s3517_s24, 3  ;;  %p599_p6 = scmp.lt.s32.totalorder %s2895_s19, 1 }
  0x8c   : > { %s596_s13 = scalar_select %p595_p4, %s2899_s20, 1 }
  0x8d   : > { %s3201_s1 = scalar_select %p599_p6, %s2895_s19, 1 }
  0x8e   : > { %s2227_s12 = sshll.u32 %s596_s13, 3  ;;  %s3554_s11 = sld [smem:[#allocation34_spill]] }
  0x8f   : > { %s598_s26 = scalar_lea.vmem %s3493_s0, %s2227_s12  ;;  %s2299_s30 = sshll.u32 %s3201_s1, 5 }
  0x90   : > { %s2300_s7 = sshll.u32 %s3201_s1, 4  ;;  %s3555_s25 = sld [smem:[#allocation38_spill]] }
  0x91   : > { %s3556_s4 = sld [smem:[#allocation40_spill]]  ;;  %s518_s18 = scalar_lea.vmem [#allocation16], %s3168_s29 }
  0x92   : > { %s3557_s3 = sld [smem:[#allocation42_spill]]  ;;  %s3228_s2 = scalar_lea.vmem [#allocation17], %s2226_s27 }
  0x93   : > { %p2234_p8 = scmp.ne.s32.totalorder %s2895_s19, 0 }
  0x94   : > { %s601_s28 = scalar_lea.vmem %s3554_s11, %s3201_s1 }
  0x95   : > { %621 = sbr.rel (%p2234_p8) target bundleno = 156 (0x9c), region = 84 }
  0x96   : > { %s3215_s23 = scalar_lea.vmem %s3555_s25, %s2299_s30 }
  0x97   : > { %s3220_s8 = scalar_lea.vmem %s3556_s4, %s2300_s7 }
  0x98   : > { %s3225_s12 = scalar_lea.vmem %s3557_s3, %s2299_s30 }
  0x9a   : > { %v622_v0 = vld [vmem:[%s598_s26] sm:$0xff] }
  0x9b   : > { %623 = vst [vmem:[%s3228_s2] sm:$0xff] %v622_v0 }
  0x9c PF: > { %v2920_v3 = vmov 0.0   ;;  %v2581_v4 = vld [vmem:[%s3172_s9 + $0x38] sm:$0xff]   ;;  %v2582_v5 = vld [vmem:[%s3172_s9 + $0x30] sm:$0xff]   ;;  %v2583_v6 = vld [vmem:[%s3172_s9 + $0x28] sm:$0xff]   ;;  %vm2921_vm0 = vmmov 0   ;;  %v746_v24 = vlaneseq  ;;  %vm801_vm4 = vcmask 523264  }
  0x9d   : > { %2347 = vmatprep.subr.bf16.mxu0 %v2920_v3  ;;  %2367 = vmatprep.subr.bf16.mxu1 %v2920_v3  ;;  %v2584_v7 = vld [vmem:[%s3172_s9 + $0x20] sm:$0xff]   ;;  %v2585_v8 = vld [vmem:[%s3172_s9 + $0x18] sm:$0xff]   ;;  %v2586_v9 = vld [vmem:[%s3172_s9 + $0x10] sm:$0xff]   ;;  %vm893_vm5 = vcmask 1041408   ;;  %vm890_vm6 = vcmask 15360   ;;  %vm883_vm7 = vcmask 130048  }
  0x9e   : > { %2348 = vmatpush3.bf16.msra.mxu0 %v2581_v4  ;;  %2363 = vmatprep.mubr.msk.bf16.mxu0 %vm2921_vm0, %v2920_v3  ;;  %v2587_v10 = vld [vmem:[%s3172_s9 + $0x8] sm:$0xff]   ;;  %v2588_v11 = vld [vmem:[%s3172_s9] sm:$0xff]   ;;  %v2235_v16 = vld [vmem:[%s601_s28] ss:$0 sm:$0xff]  ;;  %v3275_v25 = vshrl.u32 %v746_v24, 7  ;;  %s3559_s9 = scalar_lea.vmem [#allocation13], %s3168_s29 }
  0x9f   : > { %2349 = vmatprep.subr.bf16.mxu0 %v2920_v3  ;;  %2375 = vmatprep.mubr.msk.bf16.mxu1 %vm2921_vm0, %v2920_v3  ;;  %v2589_v20 = vld [vmem:[%s3215_s23 + $0x18] sm:$0xff]   ;;  %v2590_v21 = vld [vmem:[%s3215_s23 + $0x10] sm:$0xff]   ;;  %v2591_v22 = vld [vmem:[%s3215_s23 + $0x8] sm:$0xff]   ;;  %s2923_s6 = smov 64   ;;  %vm1104_vm12 = vcmask 516096   ;;  %s2295_s24 = sshll.u32 %s2899_s20, 7 }
  0xa0   : > { %2368 = vmatpush3.bf16.msra.mxu1 %v2589_v20  ;;  %v2592_v23 = vld [vmem:[%s3215_s23] sm:$0xff]   ;;  %v750_v26 = vsub.s32 3, %v3275_v25  ;;  %v745_v27 = vld [vmem:[%s3180_s16] sm:$0xf]  ;;  %v760_v28 = vsub.s32 2, %v3275_v25  ;;  %v771_v29 = vsub.s32 1, %v3275_v25 }
  0xa1   : > { %2369 = vmatprep.subr.bf16.mxu1 %v2920_v3  ;;  %vm754_vm1 = vcmp.ge.s32.totalorder %v3275_v25, 1  ;;  %vm765_vm2 = vcmp.ge.s32.totalorder %v3275_v25, 2  ;;  %v782_v33 = vsub.s32 0, %v3275_v25  ;;  %vm776_vm3 = vcmp.ge.s32.totalorder %v3275_v25, 3  ;;  %v2244_v51 = vld [vmem:[%s3559_s9] ss:$0 sm:$0xff] }
  0xa2   : > { %v3233_v1 = vld [vmem:[%s3228_s2] sm:$0xff]  ;;  %2350 = vmatpush3.bf16.msra.mxu0 %v2582_v5  ;;  %v751_v30 = vrot.slane %v745_v27, %v750_v26  ;;  %v761_v32 = vrot.slane %v745_v27, %v760_v28  ;;  %v772_v37 = vrot.slane %v745_v27, %v771_v29  ;;  %v889_v60 = vld [vmem:[%s3188_s5] sm:$0x3]  ;;  %s2922_s16 = smov 126   ;;  %v986_v4 = vadd.s32 8, %v3275_v25  ;;  %s2924_s5 = smov 110  }
  0xa3   : > { %v625_v2 = vmul.f32 %v3233_v1, %v3233_v1  ;;  %2351 = vmatprep.subr.bf16.mxu0 %v2920_v3  ;;  %v783_v43 = vrot.slane %v745_v27, %v782_v33  ;;  %s1991_s27 = sshll.u32 %s3228_s2, 4  ;;  %s3561_s29 = sld [smem:[#allocation43_spill]]  ;;  %s3431_s27 = int_to_ptr.vmem [resolvable:$true] %s1991_s27 }
  0xa4   : > { %2370 = vmatpush3.bf16.msra.mxu1 %v2590_v21  ;;  %s3562_s11 = sand.u32 1, %s2875_s14   ;;  %s2783_s20 = scalar_lea.vmem %s3431_s27, 128 }
  0xa5   : > { %626 = vadd.xlane.f32.xlu0 %v625_v2  ;;  %2371 = vmatprep.subr.bf16.mxu1 %v2920_v3  ;;  %v988_v2 = vand.u32 127, %v746_v24  ;;  %s1978_s28 = scalar_lea.sflag [#allocation10], %s3562_s11  ;;  %p2784_p3 = scmp.ne.s32.totalorder %s3431_s27, %s2783_s20 }
  0xa6   : > { %2352 = vmatpush3.bf16.msra.mxu0 %v2583_v6  ;;  %s2925_s30 = smov [#allocation17]  }
  0xa7   : > { %2353 = vmatprep.subr.bf16.mxu0 %v2920_v3  ;;  %vm989_vm8 = vcmp.eq.s32.totalorder %v3275_v25, %v988_v2  ;;  %vm990_vm9 = vcmp.eq.s32.totalorder %v986_v4, %v988_v2  ;;  %p2785_p11 = pnand %p2784_p3, %p3073_p12  ;;  %s2787_s7 = sshll.u32 %s2925_s30, 4  ;;  %s2788_s7 = int_to_ptr.vmem [resolvable:$false] %s2787_s7 }
  0xa8   : > { %2372 = vmatpush3.bf16.msra.mxu1 %v2591_v22  ;;  %s2789_s10 = scalar_lea.vmem %s2788_s7, 256  ;;  %p2790_p0 = scmp.lt.s32.totalorder %s3431_s27, %s2788_s7 }
  0xa9   : > { %2373 = vmatprep.subr.bf16.mxu1 %v2920_v3  ;;  %s3429_s22 = scalar_lea.hbm %s3561_s29, %s2295_s24  ;;  %p2786_p13 = pneg %p2785_p11 }
  0xaa   : > { %2354 = vmatpush3.bf16.msra.mxu0 %v2584_v7  ;;  %v2253_v7 = vsel %vm989_vm8, 1.0, %v2920_v3  ;;  %p2791_p1 = scmp.lt.s32.totalorder %s2789_s10, %s2783_s20 }
  0xab   : > { %2355 = vmatprep.subr.bf16.mxu0 %v2920_v3 }
  0xac   : > { %2374 = vmatpush3.bf16.msra.mxu1 %v2592_v23  ;;  %p2792_p7 = por %p2791_p1, %p2790_p0 }
  0xad   : > { %2391 = vmatprep.subr.mxu1 %v2920_v3 }
  0xae   : > { %2356 = vmatpush3.bf16.msra.mxu0 %v2585_v8  ;;  %v2254_v8 = vsel %vm990_vm9, 1.0, %v2920_v3  ;;  %p2793_p9 = pnand %p2792_p7, %p2786_p13 }
  0xaf   : > { %2357 = vmatprep.subr.bf16.mxu0 %v2920_v3 }
  0xb2   : > { %2358 = vmatpush3.bf16.msra.mxu0 %v2586_v9 }
  0xb3   : > { %2359 = vmatprep.subr.bf16.mxu0 %v2920_v3 }
  0xb6   : > { %2360 = vmatpush3.bf16.msra.mxu0 %v2587_v10 }
  0xb7   : > { %2361 = vmatprep.subr.bf16.mxu0 %v2920_v3 }
  0xba   : > { %2362 = vmatpush3.bf16.msra.mxu0 %v2588_v11 }
  0xbb   : > { %2379 = vmatprep.subr.mxu0 %v2920_v3 }
 0x12e   : > { %v627_v12 = vpop.xlane.xlu0 %626 }
 0x12f   : > { %v628_v13 = vmul.f32 0.03125, %v627_v12 }
 0x131   : > { %v629_v14 = vadd.f32 1e-05, %v628_v13 }
 0x133   : > { %2597 = vrsqrt.f32 %v629_v14 }
 0x140   : > { %v2598_v15 = vpop.eup %2597 }
 0x141   : > { %v631_v17 = vmul.f32 %v2598_v15, %v3233_v1 }
 0x143   : > { %v639_v18 = vmul.f32 %v2235_v16, %v631_v17 }
 0x145   : > { %v640_v19 = vpack.c.bf16 %v639_v18, %v639_v18 }
 0x147   : > { %2364 = vmatmul.mubr.bf16.vlgmr.msra.gmra.mxu0 %v640_v19 }
 0x148   : > { %2381 = vmatprep.mubr.msk.f32.mxu0 %vm2921_vm0, %v2920_v3  ;;  %2380 = vmatpush3.msk.msra.mxu0 %vm893_vm5, %v889_v60 }
 0x149   : > { %2384 = vmatprep.subr.mxu0 %v2920_v3 }
 0x207   : > { %v3281_v31 = vpop.f32.mrf.mxu0 }
 0x208   : > { %v753_v34 = vrot.slane %v3281_v31, 7  ;;  %v764_v35 = vrot.slane %v3281_v31, 6  ;;  %v775_v36 = vrot.slane %v3281_v31, 5  ;;  %v752_v41 = vmul.f32 %v751_v30, %v3281_v31 }
 0x209   : > { %v2365_v38 = vpop.f32.mrf.mxu0  ;;  %v2288_v5 = vmul.f32 -1.442695, %v3281_v31 }
 0x20a   : > { %v757_v39 = vsel %vm754_vm1, %v753_v34, 0.0  ;;  %v768_v40 = vsel %vm765_vm2, %v764_v35, 0.0  ;;  %v779_v45 = vsel %vm776_vm3, %v775_v36, 0.0 }
 0x20b   : > { %v762_v42 = vmul.f32 %v761_v32, %v757_v39  ;;  %v742_v44 = vpop.f32.mrf.mxu0  ;;  %v773_v47 = vmul.f32 %v772_v37, %v768_v40  ;;  %v784_v50 = vmul.f32 %v783_v43, %v779_v45 }
 0x20d   : > { %v763_v46 = vadd.f32 %v762_v42, %v752_v41  ;;  %v2366_v48 = vpop.f32.mrf.mxu0 }
 0x20f   : > { %v774_v49 = vadd.f32 %v773_v47, %v763_v46 }
 0x211   : > { %v785_v52 = vadd.f32 %v784_v50, %v774_v49 }
 0x213   : > { %v793_v53 = vadd.f32 %v2244_v51, %v785_v52 }
 0x215   : > { %v2245_v54 = vmul.f32 -1.442695, %v793_v53 }
 0x217   : > { %2599 = vpow2.f32 %v2245_v54 }
 0x224   : > { %v2600_v55 = vpop.eup %2599 }
 0x225   : > { %v797_v56 = vadd.f32 1.0, %v2600_v55 }
 0x227   : > { %2601 = vrcp.f32 %v797_v56 }
 0x228   : > { %2603 = vpow2.f32 %v2288_v5 }
 0x234   : > { %v2602_v57 = vpop.eup %2601 }
 0x235   : > { %v3293_v58 = vmul.f32 %v2602_v57, %v793_v53  ;;  %v2604_v23 = vpop.eup %2603 }
 0x236   : > { %v1890_v27 = vadd.f32 1.0, %v2604_v23 }
 0x237   : > { %802 = vst.msk [vmem:[#allocation2] sm:$0xff] %vm801_vm4, %v3293_v58  ;;  %v803_v59 = vpack.c.bf16 %v3293_v58, %v3293_v58 }
 0x238   : > { %2605 = vrcp.f32 %v1890_v27 }
 0x239   : > { %2376 = vmatmul.mubr.msk.bf16.vlgmr.msra.gmra.mxu1 %vm801_vm4, %v803_v59 }
 0x23a   : > { %2395 = vmatprep.mubr.msk.f32.mxu1 %vm2921_vm0, %v2920_v3 }
 0x245   : > { %v2606_v39 = vpop.eup %2605 }
 0x246   : > { %v1893_v42 = vmul.f32 %v2606_v39, %v3281_v31 }
 0x2f9   : > { %v3304_v61 = vpop.f32.mrf.mxu1 }
 0x2fa   : > { %880 = vrot.lane.b32.xlu0 %v3304_v61, %s2922_s16  ;;  %2382 = vmatmul.mubr.msk.f32.vlgmr.msra.gmra.mxu0 %vm890_vm6, %v3304_v61 }
 0x2fb   : > { %v2377_v62 = vpop.f32.mrf.mxu1  ;;  %2388 = vmatprep.mubr.msk.f32.mxu0 %vm2921_vm0, %v2920_v3 }
 0x2fd   : > { %v876_v63 = vpop.f32.mrf.mxu1 }
 0x2ff   : > { %v2378_v0 = vpop.f32.mrf.mxu1 }
 0x36c   : > { %v881_v6 = vpop.permute.xlu0 %880 }
 0x36d   : > { %884 = vst.msk [vmem:[#allocation5] sm:$0xff] %vm883_vm7, %v881_v6 }
 0x374   : > { %v2268_v9 = vld [vmem:[#allocation5 + $0x3] ss:$0 sm:$0xff]  ;;  %v2256_v10 = vld [vmem:[#allocation5] ss:$0 sm:$0xff]  ;;  %v2284_v11 = vld [vmem:[#allocation5 + $0x7] ss:$0 sm:$0xff] }
 0x375   : > { %v1344_v12 = vmul.f32 %v2268_v9, %v2253_v7  ;;  %v1014_v13 = vmul.f32 %v2256_v10, %v2254_v8  ;;  %v1785_v16 = vmul.f32 %v2284_v11, %v2254_v8  ;;  %v1013_v17 = vmul.f32 %v2256_v10, %v2253_v7  ;;  %v2260_v18 = vld [vmem:[#allocation5 + $0x1] ss:$0 sm:$0xff]  ;;  %v2264_v28 = vld [vmem:[#allocation5 + $0x2] ss:$0 sm:$0xff]  ;;  %v2272_v36 = vld [vmem:[#allocation5 + $0x4] ss:$0 sm:$0xff] }
 0x376   : > { %v1784_v21 = vmul.f32 %v2284_v11, %v2253_v7  ;;  %v1125_v22 = vmul.f32 %v2260_v18, %v2254_v8  ;;  %v1124_v26 = vmul.f32 %v2260_v18, %v2253_v7  ;;  %v1235_v30 = vmul.f32 %v2264_v28, %v2254_v8  ;;  %v2276_v43 = vld [vmem:[#allocation5 + $0x5] ss:$0 sm:$0xff]  ;;  %v2280_v48 = vld [vmem:[#allocation5 + $0x6] ss:$0 sm:$0xff]  ;;  %v3342_v10 = vld [vmem:[%s3220_s8] sm:$0xff] }
 0x377   : > { %v1346_v14 = vsel %vm883_vm7, %v1344_v12, 0.0  ;;  %v1018_v15 = vsel %vm883_vm7, %v1014_v13, 0.0  ;;  %v1789_v19 = vsel %vm883_vm7, %v1785_v16, 0.0  ;;  %v1015_v20 = vsel %vm883_vm7, %v1013_v17, 0.0 }
 0x378   : > { %1347 = vadd.xlane.f32.xlu0 %v1346_v14  ;;  %1019 = vadd.xlane.f32.xlu1 %v1018_v15  ;;  %v1786_v24 = vsel %vm883_vm7, %v1784_v21, 0.0  ;;  %v1129_v25 = vsel %vm883_vm7, %v1125_v22, 0.0  ;;  %v1126_v29 = vsel %vm883_vm7, %v1124_v26, 0.0  ;;  %v1239_v32 = vsel %vm883_vm7, %v1235_v30, 0.0 }
 0x379   : > { %v1234_v33 = vmul.f32 %v2264_v28, %v2253_v7  ;;  %v1345_v35 = vmul.f32 %v2268_v9, %v2254_v8  ;;  %v1455_v38 = vmul.f32 %v2272_v36, %v2254_v8  ;;  %v1454_v41 = vmul.f32 %v2272_v36, %v2253_v7 }
 0x37a   : > { %v1565_v45 = vmul.f32 %v2276_v43, %v2254_v8  ;;  %v1564_v47 = vmul.f32 %v2276_v43, %v2253_v7  ;;  %v1675_v50 = vmul.f32 %v2280_v48, %v2254_v8  ;;  %v1674_v52 = vmul.f32 %v2280_v48, %v2253_v7  ;;  %v3338_v7 = vld [vmem:[%s3220_s8 + $0x8] sm:$0xff] }
 0x37b   : > { %v1236_v34 = vsel %vm883_vm7, %v1234_v33, 0.0  ;;  %v1349_v37 = vsel %vm883_vm7, %v1345_v35, 0.0  ;;  %v1459_v40 = vsel %vm883_vm7, %v1455_v38, 0.0  ;;  %v1456_v44 = vsel %vm883_vm7, %v1454_v41, 0.0 }
 0x37c   : > { %1790 = vadd.xlane.f32.xlu0 %v1789_v19  ;;  %1016 = vadd.xlane.f32.xlu1 %v1015_v20  ;;  %v1569_v46 = vsel %vm883_vm7, %v1565_v45, 0.0  ;;  %v1566_v49 = vsel %vm883_vm7, %v1564_v47, 0.0  ;;  %v1679_v51 = vsel %vm883_vm7, %v1675_v50, 0.0  ;;  %v1676_v31 = vsel %vm883_vm7, %v1674_v52, 0.0 }
 0x380   : > { %1787 = vadd.xlane.f32.xlu0 %v1786_v24  ;;  %1130 = vadd.xlane.f32.xlu1 %v1129_v25 }
 0x384   : > { %1127 = vadd.xlane.f32.xlu1 %v1126_v29 }
 0x388   : > { %1240 = vadd.xlane.f32.xlu1 %v1239_v32 }
 0x38c   : > { %1237 = vadd.xlane.f32.xlu1 %v1236_v34 }
 0x390   : > { %1350 = vadd.xlane.f32.xlu1 %v1349_v37 }
 0x394   : > { %1460 = vadd.xlane.f32.xlu1 %v1459_v40 }
 0x396   : > { %1895 = vrot.lane.b32.xlu0 %v1893_v42, %s2923_s6 }
 0x398   : > { %1457 = vadd.xlane.f32.xlu1 %v1456_v44 }
 0x39c   : > { %1570 = vadd.xlane.f32.xlu1 %v1569_v46 }
 0x3a0   : > { %1567 = vadd.xlane.f32.xlu1 %v1566_v49 }
 0x3a4   : > { %1680 = vadd.xlane.f32.xlu1 %v1679_v51 }
 0x3a8   : > { %1677 = vadd.xlane.f32.xlu1 %v1676_v31 }
 0x3b9   : > { %885 = vrot.lane.b32.xlu1 %v3304_v61, %s2924_s5 }
 0x3ba   : > { %v963_v53 = vpop.f32.mrf.mxu0 }
 0x3bb   : > { %v968_v54 = vmin.f32 %v963_v53, 20.0  ;;  %vm967_vm11 = vcmp.gt.f32.partialorder %v963_v53, 20.0 }
 0x3bc   : > { %v2383_v55 = vpop.f32.mrf.mxu0 }
 0x3bd   : > { %v969_v56 = vmul.f32 1.442695, %v968_v54 }
 0x3bf   : > { %2607 = vpow2.f32 %v969_v56 }
 0x3cc   : > { %v2608_v57 = vpop.eup %2607 }
 0x3cd   : > { %v971_v59 = vadd.f32 1.0, %v2608_v57  ;;  %v974_v60 = vmul.f32 -0.5, %v2608_v57  ;;  %v977_v63 = vand.u32 2147483647, %v2608_v57 }
 0x3cf   : > { %2609 = vlog2.f32 %v971_v59  ;;  %v975_v62 = vadd.f32 1.0, %v974_v60  ;;  %vm978_vm10 = vcmp.lt.f32.partialorder %v977_v63, 0.0004427343 }
 0x3d1   : > { %v976_v4 = vmul.f32 %v2608_v57, %v975_v62 }
 0x3dc   : > { %v2610_v0 = vpop.eup %2609 }
 0x3dd   : > { %v973_v2 = vmul.f32 0.6931472, %v2610_v0 }
 0x3df   : > { %v979_v5 = vsel %vm978_vm10, %v976_v4, %v973_v2 }
 0x3e0   : > { %v980_v61 = vsel %vm967_vm11, %v963_v53, %v979_v5 }
 0x3e1   : > { %981 = vst.msk [vmem:[#allocation3] sm:$0xff] %vm801_vm4, %v980_v61  ;;  %v982_v6 = vmul.f32 %v980_v61, %v3293_v58 }
 0x3e3   : > { %983 = vst.msk [vmem:[#allocation4] sm:$0xff] %vm801_vm4, %v982_v6 }
 0x3e8   : > { %v2255_v8 = vld [vmem:[#allocation3] ss:$0 sm:$0xff]  ;;  %v2259_v13 = vld [vmem:[#allocation3 + $0x1] ss:$0 sm:$0xff]  ;;  %v2263_v36 = vld [vmem:[#allocation3 + $0x2] ss:$0 sm:$0xff] }
 0x3e9   : > { %v1004_v9 = vmul.f32 %v2255_v8, %v3338_v7  ;;  %v1003_v12 = vmul.f32 %v2255_v8, %v3342_v10  ;;  %v1115_v15 = vmul.f32 %v2259_v13, %v3338_v7  ;;  %v1114_v58 = vmul.f32 %v2259_v13, %v3342_v10  ;;  %v2267_v45 = vld [vmem:[#allocation3 + $0x3] ss:$0 sm:$0xff]  ;;  %v2271_v51 = vld [vmem:[#allocation3 + $0x4] ss:$0 sm:$0xff]  ;;  %v2275_v59 = vld [vmem:[#allocation3 + $0x5] ss:$0 sm:$0xff] }
 0x3ea   : > { %v2257_v20 = vld [vmem:[#allocation4] ss:$0 sm:$0xff]  ;;  %v2261_v32 = vld [vmem:[#allocation4 + $0x1] ss:$0 sm:$0xff]  ;;  %v1225_v41 = vmul.f32 %v2263_v36, %v3338_v7  ;;  %v1224_v44 = vmul.f32 %v2263_v36, %v3342_v10  ;;  %v1335_v49 = vmul.f32 %v2267_v45, %v3338_v7  ;;  %v1334_v50 = vmul.f32 %v2267_v45, %v3342_v10  ;;  %v2265_v62 = vld [vmem:[#allocation4 + $0x2] ss:$0 sm:$0xff] }
 0x3eb   : > { %v1007_v11 = vmul.f32 1.442695, %v1004_v9  ;;  %v1005_v14 = vmul.f32 1.442695, %v1003_v12  ;;  %v1118_v16 = vmul.f32 1.442695, %v1115_v15  ;;  %v1445_v54 = vmul.f32 %v2271_v51, %v3338_v7 }
 0x3ec   : > { %v1116_v17 = vmul.f32 1.442695, %v1114_v58  ;;  %v1228_v46 = vmul.f32 1.442695, %v1225_v41  ;;  %v1226_v48 = vmul.f32 1.442695, %v1224_v44  ;;  %v1444_v57 = vmul.f32 %v2271_v51, %v3342_v10 }
 0x3ed   : > { %2611 = vpow2.f32 %v1007_v11  ;;  %v1338_v31 = vmul.f32 1.442695, %v1335_v49  ;;  %v1336_v53 = vmul.f32 1.442695, %v1334_v50  ;;  %v1448_v56 = vmul.f32 1.442695, %v1445_v54 }
 0x3ee   : > { %2613 = vpow2.f32 %v1005_v14  ;;  %v1446_v0 = vmul.f32 1.442695, %v1444_v57  ;;  %v1555_v2 = vmul.f32 %v2275_v59, %v3338_v7  ;;  %v1554_v8 = vmul.f32 %v2275_v59, %v3342_v10  ;;  %v2279_v11 = vld [vmem:[#allocation3 + $0x6] ss:$0 sm:$0xff]  ;;  %v2269_v15 = vld [vmem:[#allocation4 + $0x3] ss:$0 sm:$0xff] }
 0x3ef   : > { %2615 = vpow2.f32 %v1118_v16  ;;  %v2281_v54 = vld [vmem:[#allocation4 + $0x6] ss:$0 sm:$0xff] }
 0x3f0   : > { %2617 = vpow2.f32 %v1116_v17  ;;  %v1558_v14 = vmul.f32 1.442695, %v1555_v2 }
 0x3f1   : > { %2619 = vpow2.f32 %v1228_v46 }
 0x3f2   : > { %2621 = vpow2.f32 %v1226_v48  ;;  %v2277_v48 = vld [vmem:[#allocation4 + $0x5] ss:$0 sm:$0xff] }
 0x3f3   : > { %2623 = vpow2.f32 %v1338_v31 }
 0x3f4   : > { %2625 = vpow2.f32 %v1336_v53 }
 0x3f5   : > { %2627 = vpow2.f32 %v1448_v56 }
 0x3f6   : > { %2629 = vpow2.f32 %v1446_v0 }
 0x3f7   : > { %2631 = vpow2.f32 %v1558_v14 }
 0x3fa   : > { %v2612_v18 = vpop.eup %2611 }
 0x3fb   : > { %v1022_v21 = vmul.f32 0.0, %v2612_v18  ;;  %v2614_v23 = vpop.eup %2613  ;;  %v1556_v18 = vmul.f32 1.442695, %v1554_v8 }
 0x3fc   : > { %v1021_v26 = vmul.f32 0.0, %v2614_v23  ;;  %v2616_v29 = vpop.eup %2615 }
 0x3fd   : > { %v2618_v37 = vpop.eup %2617  ;;  %2633 = vpow2.f32 %v1556_v18 }
 0x3fe   : > { %v2620_v4 = vpop.eup %2619 }
 0x3ff   : > { %v2622_v9 = vpop.eup %2621 }
 0x401   : > { %v1020_v19 = vpop.xlane.xlu1 %1019 }
 0x402   : > { %v1028_v22 = vmul.f32 %v2257_v20, %v1020_v19  ;;  %v1665_v19 = vmul.f32 %v2279_v11, %v3338_v7 }
 0x404   : > { %v1030_v24 = vadd.f32 %v1028_v22, %v1022_v21  ;;  %v1664_v22 = vmul.f32 %v2279_v11, %v3342_v10 }
 0x405   : > { %v1017_v25 = vpop.xlane.xlu1 %1016 }
 0x406   : > { %v1027_v27 = vmul.f32 %v2257_v20, %v1017_v25  ;;  %2385 = vmatpush3.msra.mxu0 %v1030_v24  ;;  %v1133_v33 = vmul.f32 %v2616_v29, %v1030_v24  ;;  %v2624_v20 = vpop.eup %2623  ;;  %v1348_v24 = vpop.xlane.xlu0 %1347  ;;  %v2283_v25 = vld [vmem:[#allocation3 + $0x7] ss:$0 sm:$0xff]  ;;  %v1668_v29 = vmul.f32 1.442695, %v1665_v19 }
 0x407   : > { %2386 = vmatprep.subr.mxu0 %v2920_v3  ;;  %v2626_v23 = vpop.eup %2625  ;;  %v1774_v36 = vmul.f32 %v2283_v25, %v3342_v10 }
 0x408   : > { %v1029_v28 = vadd.f32 %v1027_v27, %v1021_v26  ;;  %2635 = vpow2.f32 %v1668_v29 }
 0x409   : > { %v1131_v30 = vpop.xlane.xlu1 %1130  ;;  %v1776_v46 = vmul.f32 1.442695, %v1774_v36 }
 0x40a   : > { %v1139_v34 = vmul.f32 %v2261_v32, %v1131_v30  ;;  %2387 = vmatpush3.msra.mxu0 %v1029_v28  ;;  %v1132_v39 = vmul.f32 %v2618_v37, %v1029_v28  ;;  %v1358_v30 = vmul.f32 %v2269_v15, %v1348_v24  ;;  %v1791_v2 = vpop.xlane.xlu0 %1790  ;;  %v2594_v24 = vld [vmem:[%s3225_s12 + $0x10] sm:$0xff]  }
 0x40b   : > { %2405 = vmatprep.subr.mxu0 %v2920_v3 }
 0x40c   : > { %v1141_v35 = vadd.f32 %v1139_v34, %v1133_v33  ;;  %v1666_v33 = vmul.f32 1.442695, %v1664_v22  ;;  %v2628_v34 = vpop.eup %2627 }
 0x40d   : > { %v1128_v38 = vpop.xlane.xlu1 %1127 }
 0x40e   : > { %v1138_v40 = vmul.f32 %v2261_v32, %v1128_v38  ;;  %2392 = vmatpush3.msra.mxu1 %v1141_v35  ;;  %v1243_v5 = vmul.f32 %v2620_v4, %v1141_v35  ;;  %v1775_v32 = vmul.f32 %v2283_v25, %v3338_v7  ;;  %v2273_v35 = vld [vmem:[#allocation4 + $0x4] ss:$0 sm:$0xff]  ;;  %2637 = vpow2.f32 %v1666_v33  ;;  %v1788_v14 = vpop.xlane.xlu0 %1787  ;;  %v2595_v25 = vld [vmem:[%s3225_s12 + $0x8] sm:$0xff]  }
 0x40f   : > { %2393 = vmatprep.subr.mxu1 %v2920_v3 }
 0x410   : > { %v1140_v42 = vadd.f32 %v1138_v40, %v1132_v39 }
 0x411   : > { %v1241_v43 = vpop.xlane.xlu1 %1240 }
 0x412   : > { %2394 = vmatpush3.msra.mxu1 %v1140_v42  ;;  %v1249_v63 = vmul.f32 %v2265_v62, %v1241_v43  ;;  %v1242_v13 = vmul.f32 %v2622_v9, %v1140_v42  ;;  %v1778_v42 = vmul.f32 1.442695, %v1775_v32  ;;  %v2630_v43 = vpop.eup %2629 }
 0x413   : > { %2398 = vmatprep.subr.mxu1 %v2920_v3  ;;  %v2632_v10 = vpop.eup %2631 }
 0x414   : > { %v3359_v12 = vadd.f32 %v1249_v63, %v1243_v5  ;;  %2639 = vpow2.f32 %v1778_v42 }
 0x415   : > { %v1238_v47 = vpop.xlane.xlu1 %1237  ;;  %2641 = vpow2.f32 %v1776_v46 }
 0x416   : > { %v1248_v61 = vmul.f32 %v2265_v62, %v1238_v47  ;;  %v1353_v21 = vmul.f32 %v2624_v20, %v3359_v12 }
 0x418   : > { %v3361_v16 = vadd.f32 %v1248_v61, %v1242_v13  ;;  %v2285_v13 = vld [vmem:[#allocation4 + $0x7] ss:$0 sm:$0xff] }
 0x419   : > { %v1351_v52 = vpop.xlane.xlu1 %1350 }
 0x41a   : > { %v1359_v58 = vmul.f32 %v2269_v15, %v1351_v52  ;;  %v1352_v26 = vmul.f32 %v2626_v23, %v3361_v16  ;;  %v2634_v52 = vpop.eup %2633  ;;  %v1799_v15 = vmul.f32 %v2285_v13, %v1791_v2  ;;  %v2593_v23 = vld [vmem:[%s3225_s12 + $0x18] sm:$0xff]  }
 0x41c   : > { %v1361_v27 = vadd.f32 %v1359_v58, %v1353_v21  ;;  %v1360_v39 = vadd.f32 %v1358_v30, %v1352_v26  ;;  %v1798_v58 = vmul.f32 %v2285_v13, %v1788_v14  ;;  %v2596_v26 = vld [vmem:[%s3225_s12] sm:$0xff]  }
 0x41d   : > { %v1461_v55 = vpop.xlane.xlu1 %1460 }
 0x41e   : > { %v1463_v37 = vmul.f32 %v2628_v34, %v1361_v27  ;;  %v1469_v38 = vmul.f32 %v2273_v35, %v1461_v55  ;;  %v1462_v45 = vmul.f32 %v2630_v43, %v1360_v39  ;;  %v1877_v43 = vld [vmem:[#allocation2] sm:$0xff] }
 0x420   : > { %v1471_v44 = vadd.f32 %v1469_v38, %v1463_v37 }
 0x421   : > { %v1458_v60 = vpop.xlane.xlu1 %1457 }
 0x422   : > { %v1468_v41 = vmul.f32 %v2273_v35, %v1458_v60  ;;  %v1573_v50 = vmul.f32 %v2632_v10, %v1471_v44  ;;  %v2636_v60 = vpop.eup %2635 }
 0x423   : > { %v2638_v0 = vpop.eup %2637 }
 0x424   : > { %v1470_v7 = vadd.f32 %v1468_v41, %v1462_v45  ;;  %v2640_v9 = vpop.eup %2639 }
 0x425   : > { %v1571_v6 = vpop.xlane.xlu1 %1570 }
 0x426   : > { %v1579_v49 = vmul.f32 %v2277_v48, %v1571_v6  ;;  %v1572_v53 = vmul.f32 %v2634_v52, %v1470_v7 }
 0x428   : > { %v1581_v31 = vadd.f32 %v1579_v49, %v1573_v50 }
 0x429   : > { %v1568_v17 = vpop.xlane.xlu1 %1567 }
 0x42a   : > { %v1578_v51 = vmul.f32 %v2277_v48, %v1568_v17  ;;  %v1683_v62 = vmul.f32 %v2636_v60, %v1581_v31  ;;  %v1896_v48 = vpop.permute.xlu0 %1895 }
 0x42c   : > { %v1580_v55 = vadd.f32 %v1578_v51, %v1572_v53 }
 0x42d   : > { %v1681_v28 = vpop.xlane.xlu1 %1680 }
 0x42e   : > { %v1689_v56 = vmul.f32 %v2281_v54, %v1681_v28  ;;  %v1682_v5 = vmul.f32 %v2638_v0, %v1580_v55 }
 0x430   : > { %v1691_v4 = vadd.f32 %v1689_v56, %v1683_v62 }
 0x431   : > { %v1678_v40 = vpop.xlane.xlu1 %1677 }
 0x432   : > { %v1688_v63 = vmul.f32 %v2281_v54, %v1678_v40  ;;  %v1793_v11 = vmul.f32 %v2640_v9, %v1691_v4 }
 0x434   : > { %v1690_v61 = vadd.f32 %v1688_v63, %v1682_v5  ;;  %v1801_v17 = vadd.f32 %v1799_v15, %v1793_v11 }
 0x435   : > { %v886_v47 = vpop.permute.xlu1 %885 }
 0x436   : > { %888 = vst.msk [vmem:[#allocation6] sm:$0xff] %vm883_vm7, %v886_v47 }
 0x43d   : > { %v998_v57 = vld [vmem:[#allocation6] sm:$0x1]  ;;  %v1109_v59 = vld [vmem:[#allocation6 + $0x1] sm:$0x1]  ;;  %v1219_v6 = vld [vmem:[#allocation6 + $0x2] sm:$0x1] }
 0x43e   : > { %2389 = vmatmul.mubr.msk.f32.vlgmr.msra.gmra.mxu0 %vm883_vm7, %v998_v57  ;;  %2396 = vmatmul.mubr.msk.f32.vlgmr.msra.gmra.mxu1 %vm883_vm7, %v1109_v59  ;;  %v1329_v8 = vld [vmem:[#allocation6 + $0x3] sm:$0x1]  ;;  %v1439_v18 = vld [vmem:[#allocation6 + $0x4] sm:$0x1]  ;;  %v1549_v19 = vld [vmem:[#allocation6 + $0x5] sm:$0x1] }
 0x43f   : > { %2399 = vmatpush3.msra.mxu1 %v3359_v12  ;;  %2406 = vmatpush3.msra.mxu0 %v1361_v27  ;;  %v2642_v12 = vpop.eup %2641  ;;  %v1659_v21 = vld [vmem:[#allocation6 + $0x6] sm:$0x1]  ;;  %v1769_v22 = vld [vmem:[#allocation6 + $0x7] sm:$0x1] }
 0x440   : > { %2400 = vmatprep.subr.mxu1 %v2920_v3  ;;  %2407 = vmatprep.subr.mxu0 %v2920_v3 }
 0x441   : > { %2401 = vmatpush3.msra.mxu1 %v3361_v16  ;;  %2408 = vmatpush3.msra.mxu0 %v1360_v39  ;;  %v1792_v16 = vmul.f32 %v2642_v12, %v1690_v61 }
 0x442   : > { %2402 = vmatprep.mubr.msk.f32.mxu1 %vm2921_vm0, %v2920_v3  ;;  %2409 = vmatprep.mubr.msk.f32.mxu0 %vm2921_vm0, %v2920_v3 }
 0x443   : > { %2412 = vmatprep.subr.mxu1 %v2920_v3  ;;  %2419 = vmatprep.subr.mxu0 %v2920_v3  ;;  %v1800_v20 = vadd.f32 %v1798_v58, %v1792_v16 }
 0x444   : > { %2403 = vmatmul.mubr.msk.f32.vlgmr.msra.gmra.mxu1 %vm883_vm7, %v1219_v6  ;;  %2410 = vmatmul.mubr.msk.f32.vlgmr.msra.gmra.mxu0 %vm883_vm7, %v1329_v8 }
 0x445   : > { %2413 = vmatpush3.msra.mxu1 %v1471_v44  ;;  %2420 = vmatpush3.msra.mxu0 %v1581_v31  ;;  %v2287_v44 = vld [vmem:[%s518_s18] ss:$0 sm:$0xff] }
 0x446   : > { %2414 = vmatprep.subr.mxu1 %v2920_v3  ;;  %2421 = vmatprep.subr.mxu0 %v2920_v3  ;;  %v1885_v45 = vmul.f32 %v2287_v44, %v1877_v43 }
 0x447   : > { %2415 = vmatpush3.msra.mxu1 %v1470_v7  ;;  %2422 = vmatpush3.msra.mxu0 %v1580_v55 }
 0x448   : > { %2416 = vmatprep.mubr.msk.f32.mxu1 %vm2921_vm0, %v2920_v3  ;;  %2423 = vmatprep.mubr.msk.f32.mxu0 %vm2921_vm0, %v2920_v3 }
 0x449   : > { %2426 = vmatprep.subr.mxu1 %v2920_v3  ;;  %2433 = vmatprep.subr.mxu0 %v2920_v3 }
 0x44a   : > { %2417 = vmatmul.mubr.msk.f32.vlgmr.msra.gmra.mxu1 %vm883_vm7, %v1439_v18  ;;  %2424 = vmatmul.mubr.msk.f32.vlgmr.msra.gmra.mxu0 %vm883_vm7, %v1549_v19 }
 0x44b   : > { %2427 = vmatpush3.msra.mxu1 %v1691_v4  ;;  %2434 = vmatpush3.msra.mxu0 %v1801_v17 }
 0x44c   : > { %2428 = vmatprep.subr.mxu1 %v2920_v3  ;;  %2435 = vmatprep.subr.mxu0 %v2920_v3 }
 0x44d   : > { %2429 = vmatpush3.msra.mxu1 %v1690_v61  ;;  %2436 = vmatpush3.msra.mxu0 %v1800_v20 }
 0x44e   : > { %2430 = vmatprep.mubr.msk.f32.mxu1 %vm2921_vm0, %v2920_v3  ;;  %2437 = vmatprep.mubr.msk.f32.mxu0 %vm2921_vm0, %v2920_v3 }
 0x44f   : > { %2431 = vmatmul.mubr.msk.f32.vlgmr.msra.gmra.mxu1 %vm883_vm7, %v1659_v21  ;;  %2438 = vmatmul.mubr.msk.f32.vlgmr.msra.gmra.mxu0 %vm883_vm7, %v1769_v22 }
 0x450   : > { %2440 = vmatprep.subr.bf16.mxu1 %v2920_v3  ;;  %2448 = vmatprep.mubr.msk.bf16.mxu1 %vm2921_vm0, %v2920_v3 }
 0x451   : > { %2441 = vmatpush3.bf16.msra.mxu1 %v2593_v23 }
 0x452   : > { %2442 = vmatprep.subr.bf16.mxu1 %v2920_v3 }
 0x455   : > { %2443 = vmatpush3.bf16.msra.mxu1 %v2594_v24 }
 0x456   : > { %2444 = vmatprep.subr.bf16.mxu1 %v2920_v3 }
 0x459   : > { %2445 = vmatpush3.bf16.msra.mxu1 %v2595_v25 }
 0x45a   : > { %2446 = vmatprep.subr.bf16.mxu1 %v2920_v3 }
 0x45d   : > { %2447 = vmatpush3.bf16.msra.mxu1 %v2596_v26 }
 0x4fe   : > { %v1100_v27 = vpop.f32.mrf.mxu0  ;;  %v1211_v28 = vpop.f32.mrf.mxu1 }
 0x4ff   : > { %1105 = vst.msk [vmem:[#allocation7] sm:$0x1] %vm1104_vm12, %v1100_v27  ;;  %1215 = vst.msk [vmem:[#allocation7 + $0x1] sm:$0x1] %vm1104_vm12, %v1211_v28 }
 0x500   : > { %v2390_v29 = vpop.f32.mrf.mxu0  ;;  %v2397_v30 = vpop.f32.mrf.mxu1 }
 0x504   : > { %v1321_v32 = vpop.f32.mrf.mxu1  ;;  %v1431_v33 = vpop.f32.mrf.mxu0 }
 0x505   : > { %1325 = vst.msk [vmem:[#allocation7 + $0x2] sm:$0x1] %vm1104_vm12, %v1321_v32  ;;  %1435 = vst.msk [vmem:[#allocation7 + $0x3] sm:$0x1] %vm1104_vm12, %v1431_v33 }
 0x506   : > { %v2404_v34 = vpop.f32.mrf.mxu1  ;;  %v2411_v35 = vpop.f32.mrf.mxu0 }
 0x50a   : > { %v1541_v3 = vpop.f32.mrf.mxu1  ;;  %v1651_v36 = vpop.f32.mrf.mxu0 }
 0x50b   : > { %1545 = vst.msk [vmem:[#allocation7 + $0x4] sm:$0x1] %vm1104_vm12, %v1541_v3  ;;  %1655 = vst.msk [vmem:[#allocation7 + $0x5] sm:$0x1] %vm1104_vm12, %v1651_v36 }
 0x50c   : > { %v2418_v37 = vpop.f32.mrf.mxu1  ;;  %v2425_v38 = vpop.f32.mrf.mxu0 }
 0x50f   : > { %v1761_v39 = vpop.f32.mrf.mxu1  ;;  %v1871_v40 = vpop.f32.mrf.mxu0 }
 0x510   : > { %1765 = vst.msk [vmem:[#allocation7 + $0x6] sm:$0x1] %vm1104_vm12, %v1761_v39  ;;  %1875 = vst.msk [vmem:[#allocation7 + $0x7] sm:$0x1] %vm1104_vm12, %v1871_v40 }
 0x511   : > { %v2432_v41 = vpop.f32.mrf.mxu1  ;;  %v2439_v42 = vpop.f32.mrf.mxu0 }
 0x517   : > { %v1876_v46 = vld [vmem:[#allocation7] sm:$0xff] }
 0x518   : > { %v1886_v47 = vadd.f32 %v1885_v45, %v1876_v46 }
 0x51a   : > { %v1898_v7 = vmul.f32 %v1896_v48, %v1886_v47 }
 0x51c   : > { %v1899_v49 = vpack.c.bf16 %v1898_v7, %v1898_v7 }
 0x51e   : > { %2449 = vmatmul.mubr.msk.bf16.vlgmr.msra.gmra.mxu1 %vm801_vm4, %v1899_v49 }
 0x5de   : > { %v1969_v10 = vpop.f32.mrf.mxu1 }
 0x5df   : > { %v1975_v50 = vadd.f32 %v1969_v10, %v3233_v1 }
 0x5e0   : > { %v2450_v51 = vpop.f32.mrf.mxu1 }
 0x5e1   : > { %1976 = vst [vmem:[%s3228_s2] sm:$0xff] %v1975_v50 }
 0x5e2   : > { %v1972_v52 = vpop.f32.mrf.mxu1 }
 0x5e3   : > { %2796 = shalt.err (!%p2793_p9)
}
 0x5e4   : > { %s2797_s15 = scalar_lea.hbm %s3429_s22, 128  ;;  %s2801_s13 = scalar_lea.hbm %s3561_s29, 256 }
 0x5e5   : > { %p2798_p10 = scmp.ne.s32.totalorder %s3429_s22, %s2797_s15  ;;  %p2802_p6 = scmp.lt.s32.totalorder %s3429_s22, %s3561_s29 }
 0x5e6   : > { %p2803_p8 = scmp.lt.s32.totalorder %s2801_s13, %s2797_s15 }
 0x5e7   : > { %p2799_p5 = pnand %p2798_p10, %p3073_p12 }
 0x5e8   : > { %p2804_p3 = por %p2803_p8, %p2802_p6 }
 0x5e9   : > { %p2800_p4 = pneg %p2799_p5 }
 0x5eb   : > { %p2805_p11 = pnand %p2804_p3, %p2800_p4 }
 0x5ed   : > { %2808 = shalt.err (!%p2805_p11)
}
 0x5ee   : > { %2462 = dma.vmem_to_hbm [thread:$0]  (%p3073_p12), %s3431_s27, 128, %s3429_s22, %s1978_s28   ;;  %v2451_v1 = vpop.f32.mrf.mxu1 }
 0x5ef PF: > { %s3563_s18 = sld [smem:[#allocation27_spill]] }
 0x5f0   : > { %s3564_s2 = sld [smem:[#allocation22_spill]] }
 0x5f5   : > { %p2485_p13 = scmp.ge.s32.totalorder %s3563_s18, 2 }
 0x5f6   : > { %s2003_s19 = sand.u32 1, %s3564_s2  }
 0x5f7   : > { %p2481_p0 = pnand %p2485_p13, %p3083_p2  ;;  %s2004_s21 = scalar_lea.sflag [#allocation10], %s2003_s19 }
 0x5f9   : > { %p2482_p1 = pneg %p2481_p0 }
 0x5fb   : > { %2866 = dma.done.wait (%p2482_p1), %s2004_s21, 128  }
 0x5fc   : > { %2868 = vsyncadd (%p2482_p1), %s2004_s21, 4294967168  ;;  %s32_s23 = sadd.s32 1, %s3563_s18   ;;  %s3566_s9 = sld [smem:[#allocation23_spill]] }
 0x5fd   : > { %p29_p7 = scmp.ge.s32.totalorder %s32_s23, 6   ;;  %s3567_s15 = sld [smem:[#allocation31_spill]] }
 0x5fe   : > { %s3568_s6 = sld [smem:[#allocation24_spill]]  ;;  %s3574_s13 = smov %s2875_s14 }
 0x5ff   : > { %s3569_s18 = sld [smem:[#allocation30_spill]]  ;;  %s3576_s16 = smov %s2887_s17 }
 0x600   : > { %s3570_s19 = sld [smem:[#allocation25_spill]]  ;;  %31 = sbr.rel (!%p29_p7) target bundleno = 24 (0x18), region = 172 }
 0x601   : > { %s3571_s20 = sld [smem:[#allocation26_spill]] }
 0x602   : > { %s3572_s21 = sld [smem:[#allocation28_spill]]  ;;  %s3575_s14 = smov %s3566_s9 }
 0x603   : > { %s3573_s22 = sld [smem:[#allocation29_spill]] }
 0x604   : > { %s3577_s17 = smov %s3568_s6 }
 0x605   :  { %2009 = vsyncpa [#allocation9], 1 }
 0x606   :  { %2011 = vsyncpa [#allocation9 + $0x1], 1 }
 0x607   :  { %2012 = vsyncpa [#allocation12], 1 }
 0x608   :  { %2014 = vsyncpa [#allocation12 + $0x1], 1 }
 0x609   :  { %2015 = vsyncpa [#allocation15], 1 }
 0x60a   :  { %2017 = vsyncpa [#allocation15 + $0x1], 1 }
 0x60b   :  { %2018 = vsyncpa [#allocation10], 1 }
 0x60c   :  { %2020 = vsyncpa [#allocation10 + $0x1], 1 }

</bundles_post_ra>
